<compile_context>
chip_gen: v5e
topology: v5e:2x2
jax: 0.10.0
libtpu: 0.0.40
codegen_flags: <defaults>
</compile_context>

<pallas_src>
import jax
import jax.numpy as jnp
from jax.experimental import pallas as pl
from jax.experimental.pallas import tpu as pltpu

BN_EPS = 1e-5


def bn_add_conv1x1_kernel(x_ref, r_ref, w_ref, gb_ref, o_ref):
    # x_ref, r_ref: (C_in, M)   w_ref: (C_out_blk, C_in)
    # gb_ref: (C_in, 2)  [:,0]=gamma [:,1]=beta      o_ref: (C_out_blk, M)
    m = x_ref.shape[1]
    inv_m = jnp.float32(1.0 / m)

    # --- Phase 1: single-pass batch statistics. x is consumed by the reduction only,
    #     so the full x tile does not have to stay live into the elementwise phase. ---
    x = x_ref[...]
    sum_x = jnp.sum(x, axis=1, keepdims=True)             # (C_in, 1)
    sum_x2 = jnp.sum(x * x, axis=1, keepdims=True)        # (C_in, 1)
    mean = sum_x * inv_m
    var = jnp.maximum(sum_x2 * inv_m - mean * mean, 0.0)  # biased variance, clamped >= 0

    gb = gb_ref[...]                                       # (C_in, 2)
    gamma = gb[:, 0:1]
    beta = gb[:, 1:2]

    # Fold BN affine: bn(x) = a * x + c  with  a = gamma * rsqrt(var + eps), c = beta - mean * a
    a = jax.lax.rsqrt(var + BN_EPS) * gamma               # (C_in, 1)
    c = beta - mean * a                                    # (C_in, 1)

    # --- Phase 2: re-read x/r from VMEM for the folded affine + residual add
    #     (keeps ~2 big tiles live instead of 3, avoiding spills). ---
    y = x_ref[...] * a + (r_ref[...] + c)                  # (C_in, M)

    # --- Phase 3: 1x1 conv in channels-first layout: out = W @ y on the MXU.
    #     Operands kept in f32: bf16 operands fail the 1e-3 reference tolerance. ---
    o_ref[...] = jnp.dot(w_ref[...], y, preferred_element_type=jnp.float32)


def _tpu_cores_per_chip():
    """Number of TensorCores per chip (2 on v7x, 1 on v5e/v6e); robust fallbacks."""
    try:
        info = pltpu.get_tpu_info()
        for attr in ("num_cores", "num_tensorcores", "tensor_cores_per_chip",
                     "cores_per_chip", "num_cores_per_chip"):
            v = getattr(info, attr, None)
            if isinstance(v, int) and v > 0:
                return v
    except Exception:
        pass
    try:
        kind = jax.devices()[0].device_kind.lower()
        if "v7" in kind:
            return 2
    except Exception:
        pass
    return 1


def _is_v5e():
    try:
        kind = jax.devices()[0].device_kind.lower()
    except Exception:
        return False
    return ("v5 lite" in kind) or ("v5e" in kind) or ("v5litepod" in kind)


def _grid_plan(c_out):
    """Return (num_output_blocks, dimension_semantics)."""
    cores = _tpu_cores_per_chip()
    if cores >= 2 and c_out % (8 * cores) == 0:
        # Shard the C_out split across TensorCores; only CORE_PARALLEL reliably does this.
        core_parallel = getattr(pltpu, "CORE_PARALLEL", "parallel")
        return cores, (core_parallel,)
    if _is_v5e() and c_out % 16 == 0:
        # Single-TC, slow HBM: 2-way split overlaps output writeback with next block's matmul.
        return 2, ("arbitrary",)
    # v6e / unknown: single grid step; extra steps only add fixed per-step overhead.
    return 1, ("arbitrary",)


def bn_add_conv1x1(x71, x58, conv_w, gamma, beta):
    """x71, x58: NCHW float32. conv_w: (C_out, C_in, 1, 1). gamma/beta: (C_in,)."""
    N, C_in, H, W = x71.shape
    C_out = conv_w.shape[0]
    M = N * H * W

    # Channels-first flatten. For N == 1 (the module's shape) this is a pure, free reshape.
    if N == 1:
        x2d = x71.reshape(C_in, M)
        r2d = x58.reshape(C_in, M)
    else:
        x2d = jnp.transpose(x71, (1, 0, 2, 3)).reshape(C_in, M)
        r2d = jnp.transpose(x58, (1, 0, 2, 3)).reshape(C_in, M)

    w2d = conv_w.reshape(C_out, C_in).astype(jnp.float32)                 # (C_out, C_in)
    gb = jnp.stack([gamma.astype(jnp.float32), beta.astype(jnp.float32)], axis=1)  # (C_in, 2)

    nblk, dim_sem = _grid_plan(C_out)
    if C_out % (8 * nblk) != 0:   # keep sublane alignment of the C_out split
        nblk, dim_sem = 1, ("arbitrary",)
    cblk = C_out // nblk

    cost = pl.CostEstimate(
        flops=2 * M * C_in * C_out,
        transcendentals=C_in,
        bytes_accessed=(2 * M * C_in + C_in * C_out + M * C_out + 2 * C_in) * 4,
    )

    out2d = pl.pallas_call(
        bn_add_conv1x1_kernel,
        out_shape=jax.ShapeDtypeStruct((C_out, M), jnp.float32),
        grid=(nblk,),
        in_specs=[
            pl.BlockSpec((C_in, M), lambda i: (0, 0)),      # x (same block every step -> fetched once)
            pl.BlockSpec((C_in, M), lambda i: (0, 0)),      # residual
            pl.BlockSpec((cblk, C_in), lambda i: (i, 0)),   # weight slab for this C_out block
            pl.BlockSpec((C_in, 2), lambda i: (0, 0)),      # fused gamma/beta
        ],
        out_specs=pl.BlockSpec((cblk, M), lambda i: (i, 0)),
        compiler_params=pltpu.CompilerParams(dimension_semantics=dim_sem),
        cost_estimate=cost,
    )(x2d, r2d, w2d, gb)

    # (C_out, M) -> NCHW (free reshape for N == 1).
    if N == 1:
        return out2d.reshape(1, C_out, H, W)
    return jnp.transpose(out2d.reshape(C_out, N, H, W), (1, 0, 2, 3))


if __name__ == "__main__":
    key = jax.random.PRNGKey(0)
    k1, k2, k3 = jax.random.split(key, 3)

    N, C_in, H, W = 1, 40, 28, 28
    C_out = 240

    x71 = jax.random.normal(k1, (N, C_in, H, W), dtype=jnp.float32)
    x58 = jax.random.normal(k2, (N, C_in, H, W), dtype=jnp.float32)

    # BatchNorm affine defaults: weight=1, bias=0.
    gamma = jnp.ones((C_in,), dtype=jnp.float32)
    beta = jnp.zeros((C_in,), dtype=jnp.float32)
    # Conv2d-ish init: scaled normal (~1/sqrt(fan_in)).
    conv_w = (jax.random.normal(k3, (C_out, C_in, 1, 1), dtype=jnp.float32)
              / jnp.sqrt(jnp.float32(C_in)))

    out = jax.jit(bn_add_conv1x1)(x71, x58, conv_w, gamma, beta)
    jax.block_until_ready(out)
    assert out.shape == (N, C_out, H, W), out.shape

    # Plain-JAX reference (training-mode BN with biased batch variance, add, 1x1 conv).
    # TODO(synk): running-stat (momentum) buffer updates of BatchNorm2d are not modeled.
    x2d = jnp.transpose(x71, (0, 2, 3, 1)).reshape(-1, C_in)
    r2d = jnp.transpose(x58, (0, 2, 3, 1)).reshape(-1, C_in)
    mean = jnp.mean(x2d, axis=0, keepdims=True)
    var = jnp.mean((x2d - mean) ** 2, axis=0, keepdims=True)
    xn = (x2d - mean) * jax.lax.rsqrt(var + BN_EPS) * gamma + beta
    ref2d = (xn + r2d) @ conv_w.reshape(C_out, C_in).T
    ref = jnp.transpose(ref2d.reshape(N, H, W, C_out), (0, 3, 1, 2))
    assert jnp.allclose(out, ref, atol=1e-3, rtol=1e-3)

    print("KERNEL_OK")
</pallas_src>

<mosaic_0001>
module attributes {stable_mosaic.version = 11 : i64} {
  func.func @bn_add_conv1x1_kernel(%arg0: i32, %arg1: memref<40x784xf32, #tpu.memory_space<vmem>>, %arg2: memref<40x784xf32, #tpu.memory_space<vmem>>, %arg3: memref<240x40xf32, #tpu.memory_space<vmem>>, %arg4: memref<40x2xf32, #tpu.memory_space<vmem>>, %arg5: memref<240x784xf32, #tpu.memory_space<vmem>>) attributes {dimension_semantics = [#tpu.dimension_semantics<arbitrary>], iteration_bounds = array<i64: 1>, scalar_prefetch = 0 : i64, scratch_operands = 0 : i64, tpu.core_type = #tpu.core_type<tc>, window_params = [{pipeline_mode = #tpu.pipeline_mode<synchronous>, transform_indices = @transform_0, window_bounds = array<i64: 40, 784>}, {pipeline_mode = #tpu.pipeline_mode<synchronous>, transform_indices = @transform_1, window_bounds = array<i64: 40, 784>}, {transform_indices = @transform_2, window_bounds = array<i64: 240, 40>}, {pipeline_mode = #tpu.pipeline_mode<synchronous>, transform_indices = @transform_3, window_bounds = array<i64: 40, 2>}, {transform_indices = @transform_4, window_bounds = array<i64: 240, 784>}]} {
    %c0 = arith.constant 0 : index
    %c0_0 = arith.constant 0 : index
    %0 = vector.load %arg1[%c0, %c0_0] : memref<40x784xf32, #tpu.memory_space<vmem>>, vector<40x784xf32>
    %cst = arith.constant dense<0.000000e+00> : vector<40xf32>
    %1 = vector.multi_reduction <add>, %0, %cst [1] : vector<40x784xf32> to vector<40xf32>
    %2 = vector.shape_cast %1 : vector<40xf32> to vector<40x1xf32>
    %3 = arith.mulf %0, %0 : vector<40x784xf32>
    %cst_1 = arith.constant dense<0.000000e+00> : vector<40xf32>
    %4 = vector.multi_reduction <add>, %3, %cst_1 [1] : vector<40x784xf32> to vector<40xf32>
    %5 = vector.shape_cast %4 : vector<40xf32> to vector<40x1xf32>
    %cst_2 = arith.constant 0.00127551018 : f32
    %6 = vector.broadcast %cst_2 : f32 to vector<40x1xf32>
    %7 = arith.mulf %2, %6 : vector<40x1xf32>
    %cst_3 = arith.constant 0.00127551018 : f32
    %8 = vector.broadcast %cst_3 : f32 to vector<40x1xf32>
    %9 = arith.mulf %5, %8 : vector<40x1xf32>
    %10 = arith.mulf %7, %7 : vector<40x1xf32>
    %11 = arith.subf %9, %10 : vector<40x1xf32>
    %cst_4 = arith.constant 0.000000e+00 : f32
    %12 = vector.broadcast %cst_4 : f32 to vector<40x1xf32>
    %13 = arith.maximumf %11, %12 : vector<40x1xf32>
    %c0_5 = arith.constant 0 : index
    %c0_6 = arith.constant 0 : index
    %14 = vector.load %arg4[%c0_5, %c0_6] : memref<40x2xf32, #tpu.memory_space<vmem>>, vector<40x2xf32>
    %15 = vector.extract_strided_slice %14 {offsets = [0, 0], sizes = [40, 1], strides = [1, 1]} : vector<40x2xf32> to vector<40x1xf32>
    %16 = vector.extract_strided_slice %14 {offsets = [0, 1], sizes = [40, 1], strides = [1, 1]} : vector<40x2xf32> to vector<40x1xf32>
    %cst_7 = arith.constant 9.99999974E-6 : f32
    %17 = vector.broadcast %cst_7 : f32 to vector<40x1xf32>
    %18 = arith.addf %13, %17 : vector<40x1xf32>
    %19 = math.rsqrt %18 : vector<40x1xf32>
    %20 = arith.mulf %19, %15 : vector<40x1xf32>
    %21 = arith.mulf %7, %20 : vector<40x1xf32>
    %22 = arith.subf %16, %21 : vector<40x1xf32>
    %c0_8 = arith.constant 0 : index
    %c0_9 = arith.constant 0 : index
    %23 = vector.load %arg1[%c0_8, %c0_9] : memref<40x784xf32, #tpu.memory_space<vmem>>, vector<40x784xf32>
    %24 = vector.broadcast %20 : vector<40x1xf32> to vector<40x784xf32>
    %25 = arith.mulf %23, %24 : vector<40x784xf32>
    %c0_10 = arith.constant 0 : index
    %c0_11 = arith.constant 0 : index
    %26 = vector.load %arg2[%c0_10, %c0_11] : memref<40x784xf32, #tpu.memory_space<vmem>>, vector<40x784xf32>
    %27 = vector.broadcast %22 : vector<40x1xf32> to vector<40x784xf32>
    %28 = arith.addf %26, %27 : vector<40x784xf32>
    %29 = arith.addf %25, %28 : vector<40x784xf32>
    %c0_12 = arith.constant 0 : index
    %c0_13 = arith.constant 0 : index
    %30 = vector.load %arg3[%c0_12, %c0_13] : memref<240x40xf32, #tpu.memory_space<vmem>>, vector<240x40xf32>
    %cst_14 = arith.constant dense<0.000000e+00> : vector<240x784xf32>
    %31 = tpu.matmul %30, %29, %cst_14 {dimension_numbers = #tpu.dot_dimension_numbers<[1], [0], [0], [1], [0, 0, 1, 1], [], []>} : vector<240x40xf32>, vector<40x784xf32>, vector<240x784xf32> -> vector<240x784xf32>
    %c0_15 = arith.constant 0 : index
    %c0_16 = arith.constant 0 : index
    %32 = vector.load %arg5[%c0_15, %c0_16] : memref<240x784xf32, #tpu.memory_space<vmem>>, vector<240x784xf32>
    tpu.vector_store %arg5[%c0_15, %c0_16], %31 {strides = array<i32>} : memref<240x784xf32, #tpu.memory_space<vmem>>, vector<240x784xf32>,
    return
  }
  func.func @transform_0(%arg0: i32) -> (i32, i32) {
    %c0_i32 = arith.constant 0 : i32
    %c0_i32_0 = arith.constant 0 : i32
    %c0_i32_1 = arith.constant 0 : i32
    return %c0_i32, %c0_i32_0 : i32, i32
  }
  func.func @transform_1(%arg0: i32) -> (i32, i32) {
    %c0_i32 = arith.constant 0 : i32
    %c0_i32_0 = arith.constant 0 : i32
    %c0_i32_1 = arith.constant 0 : i32
    return %c0_i32, %c0_i32_0 : i32, i32
  }
  func.func @transform_2(%arg0: i32) -> (i32, i32) {
    %c0_i32 = arith.constant 0 : i32
    %c0_i32_0 = arith.constant 0 : i32
    return %arg0, %c0_i32 : i32, i32
  }
  func.func @transform_3(%arg0: i32) -> (i32, i32) {
    %c0_i32 = arith.constant 0 : i32
    %c0_i32_0 = arith.constant 0 : i32
    %c0_i32_1 = arith.constant 0 : i32
    return %c0_i32, %c0_i32_0 : i32, i32
  }
  func.func @transform_4(%arg0: i32) -> (i32, i32) {
    %c0_i32 = arith.constant 0 : i32
    %c0_i32_0 = arith.constant 0 : i32
    return %arg0, %c0_i32 : i32, i32
  }
}

</mosaic_0001>

<bundles_post_ra>
// kernel: bn_add_conv1x1.1
= control target key start
LH: loop header
LB: loop body
LE: loop exit
PB: predicated region body
PF: predicated region fallthrough
CT: control target
= control target key end

     0   :  { %vm57_vm0 = vcmask 130048   ;;  %s1820_s13 = smov 1   ;;  %s3696_s0 = inlined_call_operand.vmem [shape: f32[40,784], index: 0, kind: input, shape index: {}]   ;;  %s3697_s3 = inlined_call_operand.vmem [shape: f32[40,2], index: 3, kind: input, shape index: {}]   ;;  %s3698_s1 = inlined_call_operand.vmem [shape: f32[40,784], index: 1, kind: input, shape index: {}]   ;;  %s3699_s2 = inlined_call_operand.vmem [shape: f32[240,40], index: 2, kind: input, shape index: {}]   ;;  %s3700_s4 = inlined_call_operand.vmem [shape: f32[240,784], index: 4, kind: output, shape index: {}]  }
   0x1   :  { %v1850_v0 = vld [vmem:[%s3696_s0 + $0xe0] sm:$0xff]  ;;  %v1855_v1 = vld [vmem:[%s3696_s0 + $0xe8] sm:$0xff]  ;;  %v1860_v2 = vld [vmem:[%s3696_s0 + $0xf0] sm:$0xff] }
   0x2   :  { %v48_v3 = vld [vmem:[%s3696_s0 + $0xf8] sm:$0xff]  ;;  %v89_v4 = vadd.f32 %v1855_v1, %v1850_v0  ;;  %v126_v5 = vmul.f32 %v1850_v0, %v1850_v0  ;;  %v127_v6 = vmul.f32 %v1855_v1, %v1855_v1  ;;  %v1874_v7 = vld [vmem:[%s3696_s0 + $0x110] sm:$0xff]  ;;  %v128_v10 = vmul.f32 %v1860_v2, %v1860_v2  ;;  %v1891_v11 = vld [vmem:[%s3696_s0 + $0x100] sm:$0xff] }
   0x3   :  { %v1879_v8 = vld [vmem:[%s3696_s0 + $0x70] sm:$0xff]  ;;  %v1884_v9 = vld [vmem:[%s3696_s0 + $0x78] sm:$0xff]  ;;  %v1897_v13 = vld [vmem:[%s3696_s0 + $0x80] sm:$0xff]  ;;  %v129_v18 = vmul.f32 %v48_v3, %v48_v3  ;;  %v130_v19 = vmul.f32 %v1891_v11, %v1891_v11  ;;  %v94_v22 = vsel %vm57_vm0, %v1874_v7, 0.0  ;;  %v132_v30 = vmul.f32 %v1874_v7, %v1874_v7 }
   0x4   :  { %v90_v12 = vadd.f32 %v89_v4, %v1860_v2  ;;  %v71_v14 = vadd.f32 %v1884_v9, %v1879_v8  ;;  %v1904_v15 = vld [vmem:[%s3696_s0 + $0x108] sm:$0xff]  ;;  %v1912_v17 = vld [vmem:[%s3696_s0 + $0x38] sm:$0xff]  ;;  %v169_v20 = vadd.f32 %v127_v6, %v126_v5  ;;  %v1921_v23 = vld [vmem:[%s3696_s0 + $0xa0] sm:$0xff]  ;;  %v112_v32 = vmul.f32 %v1879_v8, %v1879_v8 }
   0x5   :  { %v34_v16 = vld [vmem:[%s3696_s0 + $0x88] sm:$0xff]  ;;  %v1927_v25 = vld [vmem:[%s3696_s0 + $0x40] sm:$0xff]  ;;  %v131_v27 = vmul.f32 %v1904_v15, %v1904_v15  ;;  %v1939_v28 = vld [vmem:[%s3696_s0 + $0x90] sm:$0xff]  ;;  %v113_v38 = vmul.f32 %v1884_v9, %v1884_v9  ;;  %v114_v39 = vmul.f32 %v1897_v13, %v1897_v13  ;;  %v76_v41 = vsel %vm57_vm0, %v1921_v23, 0.0 }
   0x6   :  { %v91_v21 = vadd.f32 %v90_v12, %v48_v3  ;;  %v72_v24 = vadd.f32 %v71_v14, %v1897_v13  ;;  %v1932_v26 = vld [vmem:[%s3696_s0 + $0x48] sm:$0xff]  ;;  %v62_v29 = vadd.f32 %v1927_v25, %v1912_v17  ;;  %v170_v31 = vadd.f32 %v169_v20, %v128_v10  ;;  %v1951_v35 = vld [vmem:[%s3696_s0 + $0x50] sm:$0xff]  ;;  %v1970_v40 = vld [vmem:[%s3696_s0 + $0x98] sm:$0xff] }
   0x7   :  { %v1956_v36 = vld [vmem:[%s3696_s0 + $0xa8] sm:$0xff]  ;;  %v1961_v37 = vld [vmem:[%s3696_s0 + $0xb0] sm:$0xff]  ;;  %v1978_v43 = vld [vmem:[%s3696_s0 + $0xb8] sm:$0xff]  ;;  %v174_v56 = vsel %vm57_vm0, %v132_v30, 0.0  ;;  %v115_v61 = vmul.f32 %v34_v16, %v34_v16  ;;  %v116_v6 = vmul.f32 %v1939_v28, %v1939_v28 }
   0x8   :  { %v92_v33 = vadd.f32 %v91_v21, %v1891_v11  ;;  %v73_v34 = vadd.f32 %v72_v24, %v34_v16  ;;  %v63_v42 = vadd.f32 %v62_v29, %v1932_v26  ;;  %v80_v44 = vadd.f32 %v1961_v37, %v1956_v36  ;;  %v1987_v48 = vld [vmem:[%s3696_s0 + $0x58] sm:$0xff]  ;;  %v1992_v49 = vld [vmem:[%s3696_s0 + $0x68] sm:$0xff]  ;;  %v2002_v53 = vld [vmem:[%s3696_s0 + $0xc0] sm:$0xff] }
   0x9   :  { %v171_v45 = vadd.f32 %v170_v31, %v129_v18  ;;  %v119_v50 = vmul.f32 %v1956_v36, %v1956_v36  ;;  %v120_v51 = vmul.f32 %v1961_v37, %v1961_v37  ;;  %v2010_v59 = vld [vmem:[%s3696_s0 + $0x60] sm:$0xff]  ;;  %v121_v60 = vmul.f32 %v1978_v43, %v1978_v43  ;;  %v2020_v3 = vld [vmem:[%s3696_s0 + $0xc8] sm:$0xff]  ;;  %v2025_v4 = vld [vmem:[%s3696_s0 + $0xd8] sm:$0xff] }
   0xa   :  { %v93_v46 = vadd.f32 %v92_v33, %v1904_v15  ;;  %v74_v47 = vadd.f32 %v73_v34, %v1939_v28  ;;  %v64_v52 = vadd.f32 %v63_v42, %v1951_v35  ;;  %v81_v54 = vadd.f32 %v80_v44, %v1978_v43 }
   0xb   :  { %v172_v55 = vadd.f32 %v171_v45, %v130_v19  ;;  %v67_v63 = vsel %vm57_vm0, %v1992_v49, 0.0  ;;  %v85_v12 = vsel %vm57_vm0, %v2025_v4, 0.0  ;;  %v122_v14 = vmul.f32 %v2002_v53, %v2002_v53  ;;  %v2038_v19 = vld [vmem:[%s3696_s0 + $0xd0] sm:$0xff] }
   0xc   :  { %v95_v57 = vadd.f32 %v94_v22, %v93_v46  ;;  %v75_v58 = vadd.f32 %v74_v47, %v1970_v40  ;;  %v65_v62 = vadd.f32 %v64_v52, %v1987_v48  ;;  %v82_v5 = vadd.f32 %v81_v54, %v2002_v53  ;;  %v2071_v52 = vld [vmem:[%s3696_s0 + $0x10] sm:$0xff] }
   0xd   :  { %v160_v16 = vadd.f32 %v120_v51, %v119_v50  ;;  %v173_v21 = vadd.f32 %v172_v55, %v131_v27  ;;  %v151_v22 = vadd.f32 %v113_v38, %v112_v32  ;;  %v123_v24 = vmul.f32 %v2020_v3, %v2020_v3  ;;  %v2053_v27 = vld [vmem:[%s3696_s0] sm:$0xff]  ;;  %v2058_v32 = vld [vmem:[%s3696_s0 + $0x8] sm:$0xff] }
   0xe   :  { %96 = vadd.xlane.f32.xlu0 %v95_v57  ;;  %v77_v10 = vadd.f32 %v76_v41, %v75_v58  ;;  %v66_v18 = vadd.f32 %v65_v62, %v2010_v59  ;;  %v83_v20 = vadd.f32 %v82_v5, %v2020_v3  ;;  %v125_v29 = vmul.f32 %v2025_v4, %v2025_v4 }
   0xf   :  { %v161_v30 = vadd.f32 %v160_v16, %v121_v60  ;;  %v105_v31 = vmul.f32 %v1912_v17, %v1912_v17  ;;  %v152_v41 = vadd.f32 %v151_v22, %v114_v39  ;;  %v106_v42 = vmul.f32 %v1927_v25, %v1927_v25 }
  0x10   :  { %78 = vadd.xlane.f32.xlu1 %v77_v10  ;;  %v68_v33 = vadd.f32 %v67_v63, %v66_v18  ;;  %v84_v34 = vadd.f32 %v83_v20, %v2038_v19  ;;  %v124_v38 = vmul.f32 %v2038_v19, %v2038_v19  ;;  %v117_v39 = vmul.f32 %v1970_v40, %v1970_v40  ;;  %v2096_v20 = vld [vmem:[%s3696_s0 + $0x20] sm:$0xff] }
  0x11   :  { %v162_v44 = vadd.f32 %v161_v30, %v122_v14  ;;  %v107_v45 = vmul.f32 %v1932_v26, %v1932_v26  ;;  %v175_v47 = vadd.f32 %v174_v56, %v173_v21  ;;  %v118_v50 = vmul.f32 %v1921_v23, %v1921_v23  ;;  %v2105_v30 = vld [vmem:[%s3696_s0 + $0x30] sm:$0xff] }
  0x12   :  { %69 = vadd.xlane.f32.xlu2 %v68_v33  ;;  %v86_v46 = vadd.f32 %v85_v12, %v84_v34  ;;  %v153_v51 = vadd.f32 %v152_v41, %v115_v61  ;;  %v108_v55 = vmul.f32 %v1951_v35, %v1951_v35  ;;  %v142_v57 = vadd.f32 %v106_v42, %v105_v31  ;;  %v2081_v61 = vld [vmem:[%s3696_s0 + $0x18] sm:$0xff]  ;;  %v2111_v33 = vld [vmem:[%s3696_s0 + $0x28] sm:$0xff] }
  0x13   :  { %v163_v54 = vadd.f32 %v162_v44, %v123_v24  ;;  %v52_v58 = vadd.f32 %v2058_v32, %v2053_v27  ;;  %v165_v60 = vsel %vm57_vm0, %v125_v29, 0.0  ;;  %v98_v62 = vmul.f32 %v2053_v27, %v2053_v27 }
  0x14   :  { %v154_v56 = vadd.f32 %v153_v51, %v116_v6  ;;  %v99_v63 = vmul.f32 %v2058_v32, %v2058_v32  ;;  %v109_v10 = vmul.f32 %v1987_v48, %v1987_v48  ;;  %v143_v12 = vadd.f32 %v142_v57, %v107_v45 }
  0x15   :  { %v164_v5 = vadd.f32 %v163_v54, %v124_v38  ;;  %v53_v14 = vadd.f32 %v52_v58, %v2071_v52  ;;  %v156_v16 = vsel %vm57_vm0, %v118_v50, 0.0  ;;  %v110_v18 = vmul.f32 %v2010_v59, %v2010_v59 }
  0x16   :  { %87 = vadd.xlane.f32.xlu0 %v86_v46  ;;  %v155_v6 = vadd.f32 %v154_v56, %v117_v39  ;;  %v100_v21 = vmul.f32 %v2071_v52, %v2071_v52  ;;  %v111_v24 = vmul.f32 %v1992_v49, %v1992_v49  ;;  %v144_v29 = vadd.f32 %v143_v12, %v108_v55 }
  0x17   :  { %v166_v22 = vadd.f32 %v165_v60, %v164_v5  ;;  %v54_v31 = vadd.f32 %v53_v14, %v2081_v61  ;;  %v101_v34 = vmul.f32 %v2081_v61, %v2081_v61  ;;  %v133_v41 = vadd.f32 %v99_v63, %v98_v62 }
  0x18   :  { %176 = vadd.xlane.f32.xlu1 %v175_v47  ;;  %v157_v42 = vadd.f32 %v156_v16, %v155_v6  ;;  %v145_v38 = vadd.f32 %v144_v29, %v109_v10  ;;  %v58_v39 = vsel %vm57_vm0, %v2105_v30, 0.0  ;;  %v102_v45 = vmul.f32 %v2096_v20, %v2096_v20 }
  0x19   :  { %v55_v44 = vadd.f32 %v54_v31, %v2096_v20  ;;  %v134_v46 = vadd.f32 %v133_v41, %v100_v21  ;;  %v147_v50 = vsel %vm57_vm0, %v111_v24, 0.0  ;;  %v104_v54 = vmul.f32 %v2105_v30, %v2105_v30 }
  0x1a   :  { %167 = vadd.xlane.f32.xlu2 %v166_v22  ;;  %v146_v47 = vadd.f32 %v145_v38, %v110_v18  ;;  %v103_v55 = vmul.f32 %v2111_v33, %v2111_v33 }
  0x1b   :  { %v56_v51 = vadd.f32 %v55_v44, %v2111_v33  ;;  %v135_v57 = vadd.f32 %v134_v46, %v101_v34  ;;  %v138_v62 = vsel %vm57_vm0, %v104_v54, 0.0 }
  0x1c   :  { %v148_v60 = vadd.f32 %v147_v50, %v146_v47 }
  0x1d   :  { %v59_v58 = vadd.f32 %v58_v39, %v56_v51  ;;  %v136_v56 = vadd.f32 %v135_v57, %v102_v45 }
  0x1e   :  { %158 = vadd.xlane.f32.xlu0 %v157_v42 }
  0x1f   :  { %v137_v63 = vadd.f32 %v136_v56, %v103_v55 }
  0x20   :  { %60 = vadd.xlane.f32.xlu1 %v59_v58 }
  0x21   :  { %v139_v5 = vadd.f32 %v138_v62, %v137_v63  ;;  %v1819_v63 = vmov 0  }
  0x22   :  { %149 = vadd.xlane.f32.xlu2 %v148_v60  ;;  %1800 = vset.pattern.permute.xlu0 %v1819_v63 }
  0x23   :  { %1801 = vset.pattern.permute.xlu1 %v1819_v63 }
  0x26   :  { %140 = vadd.xlane.f32.xlu0 %v139_v5 }
  0x81   :  { %v97_v10 = vpop.xlane.xlu0 %96 }
  0x82   :  { %v2127_v6 = vmul.f32 0.0012755102, %v97_v10 }
  0x83   :  { %v79_v12 = vpop.xlane.xlu1 %78 }
  0x84   :  { %v192_v22 = vmul.f32 %v2127_v6, %v2127_v6  ;;  %v2135_v31 = vmul.f32 0.0012755102, %v79_v12 }
  0x85   :  { %v70_v14 = vpop.xlane.xlu2 %69 }
  0x86   :  { %v2137_v44 = vmul.f32 0.0012755102, %v70_v14  ;;  %v190_v46 = vmul.f32 %v2135_v31, %v2135_v31 }
  0x88   :  { %v189_v58 = vmul.f32 %v2137_v44, %v2137_v44 }
  0x89   :  { %v88_v16 = vpop.xlane.xlu0 %87 }
  0x8a   :  { %v2129_v18 = vmul.f32 0.0012755102, %v88_v16 }
  0x8b   :  { %v177_v21 = vpop.xlane.xlu1 %176 }
  0x8c   :  { %v187_v24 = vmul.f32 0.0012755102, %v177_v21  ;;  %v191_v29 = vmul.f32 %v2129_v18, %v2129_v18 }
  0x8d   :  { %v168_v41 = vpop.xlane.xlu2 %167 }
  0x8e   :  { %v197_v34 = vsub.f32 %v187_v24, %v192_v22  ;;  %v186_v42 = vmul.f32 0.0012755102, %v168_v41 }
  0x90   :  { %v202_v38 = vmax.f32 %v197_v34, 0.0  ;;  %v196_v39 = vsub.f32 %v186_v42, %v191_v29 }
  0x91   :  { %v159_v45 = vpop.xlane.xlu0 %158 }
  0x92   :  { %v212_v47 = vadd.f32 1e-05, %v202_v38  ;;  %v185_v50 = vmul.f32 0.0012755102, %v159_v45  ;;  %v201_v51 = vmax.f32 %v196_v39, 0.0 }
  0x93   :  { %v61_v54 = vpop.xlane.xlu1 %60 }
  0x94   :  { %1806 = vrsqrt.f32 %v212_v47  ;;  %v195_v55 = vsub.f32 %v185_v50, %v190_v46  ;;  %v2141_v57 = vmul.f32 0.0012755102, %v61_v54  ;;  %v211_v60 = vadd.f32 1e-05, %v201_v51 }
  0x95   :  { %v150_v62 = vpop.xlane.xlu2 %149  ;;  %vm259_vm2 = vweird.f32 %v212_v47 }
  0x96   :  { %v200_v56 = vmax.f32 %v195_v55, 0.0  ;;  %1808 = vrsqrt.f32 %v211_v60  ;;  %v184_v5 = vmul.f32 0.0012755102, %v150_v62  ;;  %v188_v12 = vmul.f32 %v2141_v57, %v2141_v57 }
  0x97   :  { %vm249_vm5 = vweird.f32 %v211_v60 }
  0x98   :  { %v210_v10 = vadd.f32 1e-05, %v200_v56  ;;  %v194_v14 = vsub.f32 %v184_v5, %v189_v58  ;;  %v2152_v5 = vld [vmem:[%s3697_s3 + $0x20] sm:$0xff] }
  0x99   :  { %v141_v16 = vpop.xlane.xlu0 %140 }
  0x9a   :  { %v1807_v21 = vpop.eup %1806  ;;  %1810 = vrsqrt.f32 %v210_v10  ;;  %v183_v22 = vmul.f32 0.0012755102, %v141_v16  ;;  %v199_v29 = vmax.f32 %v194_v14, 0.0  ;;  %vm239_vm8 = vweird.f32 %v210_v10 }
  0x9b   :  { %v254_v24 = vmul.f32 %v1807_v21, %v212_v47  ;;  %vm260_vm1 = vweird.f32 %v1807_v21  ;;  %v2158_v47 = vld [vmem:[%s3697_s3 + $0x18] sm:$0xff] }
  0x9c   :  { %v193_v34 = vsub.f32 %v183_v22, %v188_v12  ;;  %v1809_v41 = vpop.eup %1808  ;;  %v209_v38 = vadd.f32 1e-05, %v199_v29  ;;  %vm261_vm3 = vmor %vm259_vm2, %vm260_vm1  ;;  %vm518_vm1 = vcmask 326656  }
  0x9d   :  { %v255_v42 = vmul.f32 %v1807_v21, %v254_v24  ;;  %v244_v39 = vmul.f32 %v1809_v41, %v211_v60  ;;  %vm250_vm4 = vweird.f32 %v1809_v41 }
  0x9e   :  { %v198_v45 = vmax.f32 %v193_v34, 0.0  ;;  %1812 = vrsqrt.f32 %v209_v38  ;;  %vm251_vm6 = vmor %vm249_vm5, %vm250_vm4  ;;  %vm229_vm10 = vweird.f32 %v209_v38 }
  0x9f   :  { %v256_v46 = vmul.f32 0.5, %v255_v42  ;;  %v245_v51 = vmul.f32 %v1809_v41, %v244_v39 }
  0xa0   :  { %v1811_v50 = vpop.eup %1810  ;;  %v208_v54 = vadd.f32 1e-05, %v198_v45 }
  0xa1   :  { %v257_v55 = vsub.f32 1.5, %v256_v46  ;;  %v234_v58 = vmul.f32 %v1811_v50, %v210_v10  ;;  %v246_v56 = vmul.f32 0.5, %v245_v51  ;;  %vm240_vm7 = vweird.f32 %v1811_v50 }
  0xa2   :  { %1814 = vrsqrt.f32 %v208_v54  ;;  %vm241_vm9 = vmor %vm239_vm8, %vm240_vm7  ;;  %vm219_vm14 = vweird.f32 %v208_v54 }
  0xa3   :  { %v235_v62 = vmul.f32 %v1811_v50, %v234_v58  ;;  %v258_v12 = vmul.f32 %v1807_v21, %v257_v55  ;;  %v247_v14 = vsub.f32 1.5, %v246_v56  ;;  %v205_v58 = vld [vmem:[%s3697_s3 + $0x10] sm:$0xff] }
  0xa4   :  { %v1813_v16 = vpop.eup %1812 }
  0xa5   :  { %v236_v22 = vmul.f32 0.5, %v235_v62  ;;  %v262_v24 = vsel %vm261_vm3, %v1807_v21, %v258_v12  ;;  %v224_v29 = vmul.f32 %v1813_v16, %v209_v38  ;;  %v248_v42 = vmul.f32 %v1809_v41, %v247_v14  ;;  %v203_v38 = vld [vmem:[%s3697_s3] sm:$0xff] }
  0xa6   :  { %v267_v34 = vmul.f32 %v262_v24, %v2152_v5  ;;  %vm230_vm11 = vweird.f32 %v1813_v16 }
  0xa7   :  { %v237_v39 = vsub.f32 1.5, %v236_v22  ;;  %v225_v46 = vmul.f32 %v1813_v16, %v224_v29  ;;  %v252_v55 = vsel %vm251_vm6, %v1809_v41, %v248_v42  ;;  %v204_v29 = vld [vmem:[%s3697_s3 + $0x8] sm:$0xff]  ;;  %vm231_vm12 = vmor %vm229_vm10, %vm230_vm11 }
  0xa8   :  { %v1815_v45 = vpop.eup %1814  ;;  %v272_v51 = vmul.f32 %v267_v34, %v2127_v6  ;;  %v266_v60 = vmul.f32 %v252_v55, %v2158_v47 }
  0xa9   :  { %v214_v21 = vmul.f32 %v1815_v45, %v208_v54  ;;  %v238_v56 = vmul.f32 %v1811_v50, %v237_v39  ;;  %v226_v62 = vmul.f32 0.5, %v225_v46  ;;  %vm220_vm13 = vweird.f32 %v1815_v45 }
  0xaa   :  { %286 = vrot.lane.b32.xlu1 %v272_v51, %s1820_s13  ;;  %v271_v14 = vmul.f32 %v266_v60, %v2129_v18  ;;  %vm221_vm15 = vmor %vm219_vm14, %vm220_vm13 }
  0xab   :  { %v215_v12 = vmul.f32 %v1815_v45, %v214_v21  ;;  %v242_v22 = vsel %vm241_vm9, %v1811_v50, %v238_v56  ;;  %v227_v24 = vsub.f32 1.5, %v226_v62 }
  0xac   :  { %v265_v6 = vmul.f32 %v242_v22, %v205_v58  ;;  %284 = vrot.lane.b32.xlu2 %v271_v14, %s1820_s13 }
  0xad   :  { %v216_v10 = vmul.f32 0.5, %v215_v12  ;;  %v228_v42 = vmul.f32 %v1813_v16, %v227_v24 }
  0xae   :  { %v270_v41 = vmul.f32 %v265_v6, %v2135_v31 }
  0xaf   :  { %v217_v39 = vsub.f32 1.5, %v216_v10  ;;  %v232_v46 = vsel %vm231_vm12, %v1813_v16, %v228_v42  ;;  %v1821_v16 = vmov 1  }
  0xb0   :  { %282 = vrot.lane.b32.xlu0 %v270_v41, %s1820_s13  ;;  %v264_v18 = vmul.f32 %v232_v46, %v204_v29  ;;  %1802 = vset.pattern.permute.xlu2 %v1821_v16 }
  0xb1   :  { %v218_v50 = vmul.f32 %v1815_v45, %v217_v39 }
  0xb2   :  { %v269_v31 = vmul.f32 %v264_v18, %v2137_v44 }
  0xb3   :  { %v222_v51 = vsel %vm221_vm15, %v1815_v45, %v218_v50 }
  0xb4   :  { %v263_v55 = vmul.f32 %v222_v51, %v203_v38  ;;  %280 = vrot.lane.b32.xlu2 %v269_v31, %s1820_s13  ;;  %v381_v51 = vld [vmem:[%s3698_s1 + $0xb8] sm:$0xff] }
  0xb6   :  { %v268_v21 = vmul.f32 %v263_v55, %v2141_v57 }
  0xb8   :  { %320 = vperm.xlu0 %1800, %v267_v34   ;;  %278 = vrot.lane.b32.xlu1 %v268_v21, %s1820_s13 }
  0xc0   :  { %315 = vperm.xlu1 %1801, %v266_v60   ;;  %1803 = vset.pattern.permute.xlu0 %v1821_v16 }
  0xc8   :  { %310 = vperm.xlu1 %1801, %v265_v6  }
  0xd0   :  { %1805 = vset.pattern.permute.xlu1 %v1821_v16 }
 0x106   :  { %v285_v54 = vpop.permute.xlu2 %284 }
 0x107   :  { %v296_v57 = vsub.f32 %v2158_v47, %v285_v54  ;;  %v387_v47 = vld [vmem:[%s3698_s1 + $0xe8] sm:$0xff] }
 0x10e   :  { %v281_v56 = vpop.permute.xlu2 %280 }
 0x10f   :  { %v294_v62 = vsub.f32 %v204_v29, %v281_v56 }
 0x111   :  { %400 = vperm.xlu1 %1805, %v294_v62  }
 0x11c   :  { %v287_v12 = vpop.permute.xlu1 %286 }
 0x11d   :  { %v297_v44 = vsub.f32 %v2152_v5, %v287_v12  ;;  %v386_v5 = vld [vmem:[%s3698_s1 + $0xe0] sm:$0xff] }
 0x11f   :  { %415 = vperm.xlu2 %1802, %v297_v44  }
 0x122   :  { %v283_v45 = vpop.permute.xlu0 %282 }
 0x123   :  { %v295_v14 = vsub.f32 %v205_v58, %v283_v45  ;;  %v388_v58 = vld [vmem:[%s3698_s1 + $0xf0] sm:$0xff] }
 0x125   :  { %405 = vperm.xlu0 %1803, %v295_v14  }
 0x127   :  { %410 = vperm.xlu2 %1802, %v296_v57  }
 0x12a   :  { %v279_v34 = vpop.permute.xlu1 %278  ;;  %v2180_v24 = vpop.permute.xlu0 %320 }
 0x12b   :  { %v293_v60 = vsub.f32 %v203_v38, %v279_v34  ;;  %v351_v10 = vmul.f32 %v2180_v24, %v1850_v0  ;;  %v352_v41 = vmul.f32 %v2180_v24, %v1855_v1  ;;  %v353_v39 = vmul.f32 %v2180_v24, %v1860_v2  ;;  %v379_v1 = vld [vmem:[%s3698_s1 + $0xa8] sm:$0xff]  ;;  %v380_v2 = vld [vmem:[%s3698_s1 + $0xb0] sm:$0xff] }
 0x12d   :  { %395 = vperm.xlu1 %1805, %v293_v60   ;;  %v368_v60 = vld [vmem:[%s3698_s1 + $0x50] sm:$0xff] }
 0x12f   :  { %1804 = vset.pattern.permute.xlu2 %v1819_v63  ;;  %v389_v63 = vld [vmem:[%s3698_s1 + $0xf8] sm:$0xff] }
 0x130   :  { %305 = vperm.xlu2 %1804, %v264_v18  }
 0x132   :  { %v2178_v22 = vpop.permute.xlu1 %315 }
 0x133   :  { %v344_v16 = vmul.f32 %v2178_v22, %v1956_v36  ;;  %v345_v54 = vmul.f32 %v2178_v22, %v1961_v37  ;;  %v346_v12 = vmul.f32 %v2178_v22, %v1978_v43  ;;  %v347_v37 = vmul.f32 %v2178_v22, %v2002_v53 }
 0x138   :  { %300 = vperm.xlu2 %1804, %v263_v55   ;;  %v382_v55 = vld [vmem:[%s3698_s1 + $0xc0] sm:$0xff] }
 0x13a   :  { %v2212_v0 = vpop.permute.xlu1 %310 }
 0x179   :  { %v2194_v6 = vpop.permute.xlu2 %415 }
 0x17a   :  { %v446_v29 = vadd.f32 %v2194_v6, %v386_v5  ;;  %v447_v42 = vadd.f32 %v2194_v6, %v387_v47  ;;  %v448_v46 = vadd.f32 %v2194_v6, %v388_v58  ;;  %v2206_v18 = vadd.f32 %v2194_v6, %v389_v63  ;;  %v372_v63 = vld [vmem:[%s3698_s1 + $0x70] sm:$0xff] }
 0x17c   :  { %v481_v38 = vadd.f32 %v446_v29, %v351_v10  ;;  %v2208_v50 = vadd.f32 %v447_v42, %v352_v41  ;;  %v2210_v31 = vadd.f32 %v448_v46, %v353_v39  ;;  %v373_v10 = vld [vmem:[%s3698_s1 + $0x78] sm:$0xff]  ;;  %v374_v41 = vld [vmem:[%s3698_s1 + $0x80] sm:$0xff]  ;;  %v375_v29 = vld [vmem:[%s3698_s1 + $0x88] sm:$0xff]  ;;  %v338_v39 = vmul.f32 %v2212_v0, %v1884_v9 }
 0x17d   :  { %v339_v46 = vmul.f32 %v2212_v0, %v1897_v13  ;;  %v367_v9 = vld [vmem:[%s3698_s1 + $0x48] sm:$0xff] }
 0x17e   :  { %620 = vmatpush.msra.mxu0 %v481_v38  ;;  %1782 = vmatpush.msra.mxu3 %v481_v38  ;;  %v365_v38 = vld [vmem:[%s3698_s1 + $0x38] sm:$0xff] }
 0x17f   :  { %727 = vmatpush.msra.mxu1 %v2208_v50  ;;  %834 = vmatpush.msra.mxu2 %v2210_v31 }
 0x181   :  { %v2228_v21 = vpop.permute.xlu2 %410 }
 0x182   :  { %v439_v56 = vadd.f32 %v2228_v21, %v379_v1  ;;  %v440_v62 = vadd.f32 %v2228_v21, %v380_v2  ;;  %v441_v44 = vadd.f32 %v2228_v21, %v381_v51  ;;  %v442_v45 = vadd.f32 %v2228_v21, %v382_v55 }
 0x183   :  { %v2244_v36 = vpop.permute.xlu1 %400 }
 0x184   :  { %v474_v14 = vadd.f32 %v439_v56, %v344_v16  ;;  %v2240_v57 = vadd.f32 %v440_v62, %v345_v54  ;;  %v2242_v34 = vadd.f32 %v441_v44, %v346_v12  ;;  %v2253_v43 = vadd.f32 %v442_v45, %v347_v37 }
 0x185   :  { %v428_v5 = vadd.f32 %v2244_v36, %v368_v60  ;;  %v425_v12 = vadd.f32 %v2244_v36, %v365_v38  ;;  %v427_v45 = vadd.f32 %v2244_v36, %v367_v9  ;;  %v358_v60 = vld [vmem:[%s3698_s1] sm:$0xff]  ;;  %v385_v9 = vld [vmem:[%s3698_s1 + $0xd8] sm:$0xff] }
 0x186   :  { %621 = vmatpush.msra.mxu0 %v474_v14  ;;  %1783 = vmatpush.msra.mxu3 %v474_v14 }
 0x187   :  { %728 = vmatpush.msra.mxu1 %v2240_v57  ;;  %835 = vmatpush.msra.mxu2 %v2242_v34 }
 0x18a   :  { %v2256_v47 = vpop.permute.xlu2 %305 }
 0x18b   :  { %v333_v58 = vmul.f32 %v2256_v47, %v1951_v35  ;;  %v337_v35 = vmul.f32 %v2212_v0, %v1879_v8  ;;  %v330_v55 = vmul.f32 %v2256_v47, %v1912_v17  ;;  %v366_v8 = vld [vmem:[%s3698_s1 + $0x40] sm:$0xff]  ;;  %v331_v13 = vmul.f32 %v2256_v47, %v1927_v25 }
 0x18c   :  { %v332_v16 = vmul.f32 %v2256_v47, %v1932_v26  ;;  %v426_v44 = vadd.f32 %v2244_v36, %v366_v8 }
 0x18d   :  { %v2260_v53 = vadd.f32 %v428_v5, %v333_v58  ;;  %v460_v25 = vadd.f32 %v425_v12, %v330_v55  ;;  %v359_v5 = vld [vmem:[%s3698_s1 + $0x8] sm:$0xff]  ;;  %v360_v58 = vld [vmem:[%s3698_s1 + $0x10] sm:$0xff] }
 0x18e   :  { %v2314_v26 = vadd.f32 %v426_v44, %v331_v13  ;;  %v2316_v37 = vadd.f32 %v427_v45, %v332_v16  ;;  %v376_v45 = vld [vmem:[%s3698_s1 + $0x90] sm:$0xff] }
 0x192   :  { %v2310_v14 = vpop.permute.xlu2 %300 }
 0x193   :  { %v324_v38 = vmul.f32 %v2310_v14, %v2058_v32 }
 0x197   :  { %v2274_v42 = vpop.permute.xlu0 %405 }
 0x198   :  { %v432_v1 = vadd.f32 %v2274_v42, %v372_v63  ;;  %v433_v2 = vadd.f32 %v2274_v42, %v373_v10  ;;  %v434_v51 = vadd.f32 %v2274_v42, %v374_v41  ;;  %v2301_v54 = vadd.f32 %v2274_v42, %v375_v29  ;;  %v390_v10 = vld [vmem:[%s3698_s1 + $0x100] sm:$0xff]  ;;  %v391_v29 = vld [vmem:[%s3698_s1 + $0x108] sm:$0xff] }
 0x199   :  { %v355_v63 = vmul.f32 %v2180_v24, %v1891_v11  ;;  %v356_v41 = vmul.f32 %v2180_v24, %v1904_v15  ;;  %v361_v11 = vld [vmem:[%s3698_s1 + $0x18] sm:$0xff]  ;;  %v323_v15 = vmul.f32 %v2310_v14, %v2053_v27  ;;  %v383_v27 = vld [vmem:[%s3698_s1 + $0xc8] sm:$0xff]  ;;  %v450_v32 = vadd.f32 %v2194_v6, %v390_v10 }
 0x19a   :  { %v467_v56 = vadd.f32 %v432_v1, %v337_v35  ;;  %v2303_v62 = vadd.f32 %v433_v2, %v338_v39  ;;  %v2305_v17 = vadd.f32 %v434_v51, %v339_v46  ;;  %v357_v35 = vmul.f32 %v2180_v24, %v1874_v7  ;;  %v392_v7 = vld [vmem:[%s3698_s1 + $0x110] sm:$0xff] }
 0x19b   :  { %v348_v39 = vmul.f32 %v2178_v22, %v2020_v3  ;;  %v349_v3 = vmul.f32 %v2178_v22, %v2038_v19  ;;  %v325_v51 = vmul.f32 %v2310_v14, %v2071_v52  ;;  %v451_v8 = vadd.f32 %v2194_v6, %v391_v29  ;;  %v384_v19 = vld [vmem:[%s3698_s1 + $0xd0] sm:$0xff] }
 0x19c   :  { %622 = vmatpush.msra.mxu0 %v467_v56  ;;  %1784 = vmatpush.msra.mxu3 %v467_v56  ;;  %v326_v52 = vmul.f32 %v2310_v14, %v2081_v61  ;;  %v452_v44 = vadd.f32 %v2194_v6, %v392_v7  ;;  %v2390_v61 = vld [vmem:[%s3699_s2 + $0xb8] sm:$0xff]  ;;  %v443_v6 = vadd.f32 %v2228_v21, %v383_v27  ;;  %v364_v27 = vld [vmem:[%s3698_s1 + $0x30] sm:$0xff] }
 0x19d   :  { %729 = vmatpush.msra.mxu1 %v2303_v62  ;;  %836 = vmatpush.msra.mxu2 %v2305_v17  ;;  %v444_v29 = vadd.f32 %v2228_v21, %v384_v19 }
 0x19e   :  { %623 = vmatpush.msra.mxu0 %v460_v25  ;;  %1785 = vmatpush.msra.mxu3 %v460_v25  ;;  %v377_v25 = vld [vmem:[%s3698_s1 + $0x98] sm:$0xff]  ;;  %v487_v7 = vadd.f32 %v452_v44, %v357_v35  ;;  %v329_v44 = vmul.f32 %v2310_v14, %v2105_v30  ;;  %v2488_v30 = vld [vmem:[%s3699_s2 + $0xc8] sm:$0xff] }
 0x19f   :  { %730 = vmatpush.msra.mxu1 %v2314_v26  ;;  %837 = vmatpush.msra.mxu2 %v2316_v37  ;;  %v2346_v46 = vpop.permute.xlu1 %395  ;;  %v479_v35 = vadd.f32 %v444_v29, %v349_v3  ;;  %v335_v3 = vmul.f32 %v2256_v47, %v2010_v59 }
 0x1a0   :  { %v418_v1 = vadd.f32 %v2346_v46, %v358_v60  ;;  %v419_v2 = vadd.f32 %v2346_v46, %v359_v5  ;;  %v420_v55 = vadd.f32 %v2346_v46, %v360_v58  ;;  %v421_v13 = vadd.f32 %v2346_v46, %v361_v11  ;;  %v2395_v60 = vld [vmem:[%s3699_s2] sm:$0xff] }
 0x1a1   :  { %v350_v5 = vmul.f32 %v2178_v22, %v2025_v4  ;;  %v378_v58 = vld [vmem:[%s3698_s1 + $0xa0] sm:$0xff]  ;;  %v445_v11 = vadd.f32 %v2228_v21, %v385_v9  ;;  %v485_v4 = vadd.f32 %v450_v32, %v355_v63  ;;  %v486_v22 = vadd.f32 %v451_v8, %v356_v41 }
 0x1a2   :  { %v453_v16 = vadd.f32 %v418_v1, %v323_v15  ;;  %v2376_v56 = vadd.f32 %v419_v2, %v324_v38  ;;  %v2378_v12 = vadd.f32 %v420_v55, %v325_v51  ;;  %v2403_v10 = vadd.f32 %v421_v13, %v326_v52  ;;  %v369_v2 = vld [vmem:[%s3698_s1 + $0x58] sm:$0xff]  ;;  %v363_v55 = vld [vmem:[%s3698_s1 + $0x28] sm:$0xff] }
 0x1a3   :  { %v341_v15 = vmul.f32 %v2212_v0, %v1939_v28  ;;  %v436_v38 = vadd.f32 %v2274_v42, %v376_v45  ;;  %v437_v21 = vadd.f32 %v2274_v42, %v377_v25  ;;  %v438_v1 = vadd.f32 %v2274_v42, %v378_v58  ;;  %v1816_v58 = vld [vmem:[%s3696_s0 + $0xf8] sm:$0xff] }
 0x1a4   :  { %624 = vmatpush.msra.mxu0 %v453_v16  ;;  %1786 = vmatpush.msra.mxu3 %v453_v16  ;;  %v478_v28 = vadd.f32 %v443_v6, %v348_v39  ;;  %v342_v63 = vmul.f32 %v2212_v0, %v1970_v40  ;;  %v343_v41 = vmul.f32 %v2212_v0, %v1921_v23  ;;  %v371_v40 = vld [vmem:[%s3698_s1 + $0x68] sm:$0xff]  ;;  %v362_v23 = vld [vmem:[%s3698_s1 + $0x20] sm:$0xff]  ;;  %v2568_v6 = vld [vmem:[%s3699_s2 + $0x30] sm:$0xff] }
 0x1a5   :  { %731 = vmatpush.msra.mxu1 %v2376_v56  ;;  %838 = vmatpush.msra.mxu2 %v2378_v12  ;;  %v480_v51 = vadd.f32 %v445_v11, %v350_v5  ;;  %v334_v42 = vmul.f32 %v2256_v47, %v1987_v48  ;;  %v471_v39 = vadd.f32 %v436_v38, %v341_v15  ;;  %v2466_v16 = vld [vmem:[%s3699_s2 + $0x8] sm:$0xff]  ;;  %v2581_v5 = vld [vmem:[%s3699_s2 + $0x38] sm:$0xff] }
 0x1a6   :  { %1595 = vmatmul.msk.f32.vlgmr.msra.gmra.mxu3 %vm518_vm1, %v2390_v61  ;;  %1632 = vmatmul.msk.f32.vlgmr.msra.gmra.mxu2 %vm518_vm1, %v2395_v60  ;;  %v336_v48 = vmul.f32 %v2256_v47, %v1992_v49  ;;  %v472_v32 = vadd.f32 %v437_v21, %v342_v63  ;;  %v429_v8 = vadd.f32 %v2244_v36, %v369_v2  ;;  %v1817_v15 = vld [vmem:[%s3696_s0 + $0x88] sm:$0xff]  ;;  %v2698_v38 = vld [vmem:[%s3699_s2 + $0x78] sm:$0xff] }
 0x1a7   :  { %1787 = vmatpush.msrb.mxu3 %v2208_v50  ;;  %1048 = vmatpush.msrb.mxu0 %v485_v4  ;;  %v370_v50 = vld [vmem:[%s3698_s1 + $0x60] sm:$0xff]  ;;  %v431_v49 = vadd.f32 %v2244_v36, %v371_v40  ;;  %v422_v47 = vadd.f32 %v2346_v46, %v362_v23  ;;  %v423_v9 = vadd.f32 %v2346_v46, %v363_v55  ;;  %v2733_v63 = vld [vmem:[%s3699_s2 + $0x88] sm:$0xff] }
 0x1a8   :  { %1155 = vmatpush.msrb.mxu1 %v486_v22  ;;  %1262 = vmatpush.msrb.mxu2 %v487_v7  ;;  %v430_v59 = vadd.f32 %v2244_v36, %v370_v50  ;;  %v464_v19 = vadd.f32 %v429_v8, %v334_v42  ;;  %v424_v52 = vadd.f32 %v2346_v46, %v364_v27  ;;  %v2461_v36 = vld [vmem:[%s3699_s2 + $0xc0] sm:$0xff]  ;;  %v2685_v22 = vld [vmem:[%s3699_s2 + $0x70] sm:$0xff] }
 0x1a9   :  { %1788 = vmatpush.msrb.mxu3 %v2240_v57  ;;  %1049 = vmatpush.msrb.mxu0 %v478_v28  ;;  %v473_v57 = vadd.f32 %v438_v1, %v343_v41  ;;  %v466_v13 = vadd.f32 %v431_v49, %v336_v48  ;;  %v327_v46 = vmul.f32 %v2310_v14, %v2096_v20  ;;  %v2758_v42 = vld [vmem:[%s3699_s2 + $0x90] sm:$0xff] }
 0x1aa   :  { %1156 = vmatpush.msrb.mxu1 %v479_v35  ;;  %1263 = vmatpush.msrb.mxu2 %v480_v51  ;;  %v459_v25 = vadd.f32 %v424_v52, %v329_v44  ;;  %v354_v29 = vmul.f32 %v1816_v58, %v2180_v24  ;;  %v340_v4 = vmul.f32 %v1817_v15, %v2212_v0  ;;  %v2620_v0 = vld [vmem:[%s3699_s2 + $0x48] sm:$0xff] }
 0x1ab   :  { %1789 = vmatpush.msrb.mxu3 %v2303_v62  ;;  %1050 = vmatpush.msrb.mxu0 %v471_v39  ;;  %v465_v62 = vadd.f32 %v430_v59, %v335_v3  ;;  %v457_v45 = vadd.f32 %v422_v47, %v327_v46  ;;  %v2783_v3 = vld [vmem:[%s3699_s2 + $0x98] sm:$0xff]  ;;  %v2858_v46 = vld [vmem:[%s3699_s2 + $0xb0] sm:$0xff] }
 0x1ac   :  { %1157 = vmatpush.msrb.mxu1 %v472_v32  ;;  %1264 = vmatpush.msrb.mxu2 %v473_v57  ;;  %v484_v11 = vadd.f32 %v2206_v18, %v354_v29  ;;  %v470_v24 = vadd.f32 %v2301_v54, %v340_v4  ;;  %v2605_v18 = vld [vmem:[%s3699_s2 + $0x40] sm:$0xff] }
 0x1ad   :  { %1572 = vmatmul.msk.f32.vlgmr.msra.gmra.mxu0 %vm518_vm1, %v2395_v60  ;;  %1790 = vmatpush.msrb.mxu3 %v2314_v26  ;;  %v328_v26 = vmul.f32 %v2310_v14, %v2111_v33  ;;  %v2493_v33 = vld [vmem:[%s3699_s2 + $0x10] sm:$0xff]  ;;  %v2532_v14 = vld [vmem:[%s3699_s2 + $0x20] sm:$0xff] }
 0x1ae   :  { %1602 = vmatmul.msk.f32.vlgmr.msra.gmra.mxu1 %vm518_vm1, %v2395_v60  ;;  %1051 = vmatpush.msrb.mxu0 %v464_v19  ;;  %v2659_v54 = vld [vmem:[%s3699_s2 + $0x60] sm:$0xff]  ;;  %v2833_v19 = vld [vmem:[%s3699_s2 + $0xa8] sm:$0xff] }
 0x1af   :  { %1158 = vmatpush.msrb.mxu1 %v465_v62  ;;  %1265 = vmatpush.msrb.mxu2 %v466_v13  ;;  %v458_v20 = vadd.f32 %v423_v9, %v328_v26  ;;  %v2808_v57 = vld [vmem:[%s3699_s2 + $0xa0] sm:$0xff] }
 0x1b0   :  { %1596 = vmatmul.msk.f32.gmra.mxu3 %vm518_vm1, %v2461_v36  ;;  %1633 = vmatmul.msk.f32.gmra.mxu2 %vm518_vm1, %v2466_v16 }
 0x1b1   :  { %1791 = vmatpush.msrb.mxu3 %v2376_v56  ;;  %1052 = vmatpush.msrb.mxu0 %v457_v45  ;;  %v2550_v56 = vld [vmem:[%s3699_s2 + $0x28] sm:$0xff] }
 0x1b2   :  { %1159 = vmatpush.msrb.mxu1 %v458_v20  ;;  %1266 = vmatpush.msrb.mxu2 %v459_v25 }
 0x1b3   :  { %1792 = vmatpush.msra.mxu3 %v2210_v31  ;;  %v2509_v31 = vld [vmem:[%s3699_s2 + $0xd0] sm:$0xff] }
 0x1b5   :  { %1793 = vmatpush.msra.mxu3 %v2242_v34  ;;  %1573 = vmatmul.msk.f32.gmra.mxu0 %vm518_vm1, %v2466_v16  ;;  %v2514_v34 = vld [vmem:[%s3699_s2 + $0x18] sm:$0xff] }
 0x1b6   :  { %1603 = vmatmul.msk.f32.gmra.mxu1 %vm518_vm1, %v2466_v16 }
 0x1b7   :  { %1794 = vmatpush.msra.mxu3 %v2305_v17  ;;  %v2527_v17 = vld [vmem:[%s3699_s2 + $0xd8] sm:$0xff] }
 0x1b8   :  { %1597 = vmatmul.msk.f32.gmra.mxu3 %vm518_vm1, %v2488_v30  ;;  %1634 = vmatmul.msk.f32.gmra.mxu2 %vm518_vm1, %v2493_v33 }
 0x1b9   :  { %1795 = vmatpush.msra.mxu3 %v2316_v37  ;;  %v2545_v37 = vld [vmem:[%s3699_s2 + $0xe0] sm:$0xff] }
 0x1bb   :  { %1796 = vmatpush.msra.mxu3 %v2378_v12  ;;  %v2563_v12 = vld [vmem:[%s3699_s2 + $0xe8] sm:$0xff] }
 0x1bd   :  { %1574 = vmatmul.msk.f32.gmra.mxu0 %vm518_vm1, %v2493_v33 }
 0x1be   :  { %1604 = vmatmul.msk.f32.gmra.mxu1 %vm518_vm1, %v2493_v33 }
 0x1c0   :  { %1598 = vmatmul.msk.f32.gmra.mxu3 %vm518_vm1, %v2509_v31  ;;  %1635 = vmatmul.msk.f32.gmra.mxu2 %vm518_vm1, %v2514_v34 }
 0x1c5   :  { %1575 = vmatmul.msk.f32.gmra.mxu0 %vm518_vm1, %v2514_v34 }
 0x1c6   :  { %1605 = vmatmul.msk.f32.gmra.mxu1 %vm518_vm1, %v2514_v34 }
 0x1c8   :  { %1599 = vmatmul.msk.f32.gmra.mxu3 %vm518_vm1, %v2527_v17  ;;  %1636 = vmatmul.msk.f32.gmra.mxu2 %vm518_vm1, %v2532_v14 }
 0x1cd   :  { %1576 = vmatmul.msk.f32.gmra.mxu0 %vm518_vm1, %v2532_v14 }
 0x1ce   :  { %1606 = vmatmul.msk.f32.gmra.mxu1 %vm518_vm1, %v2532_v14 }
 0x1d0   :  { %1600 = vmatmul.msk.f32.gmra.mxu3 %vm518_vm1, %v2545_v37  ;;  %1637 = vmatmul.msk.f32.gmra.mxu2 %vm518_vm1, %v2550_v56 }
 0x1d5   :  { %1577 = vmatmul.msk.f32.gmra.mxu0 %vm518_vm1, %v2550_v56 }
 0x1d6   :  { %1607 = vmatmul.msk.f32.gmra.mxu1 %vm518_vm1, %v2550_v56 }
 0x1d8   :  { %1601 = vmatmul.msk.f32.gmra.mxu3 %vm518_vm1, %v2563_v12  ;;  %1638 = vmatmul.msk.f32.gmra.mxu2 %vm518_vm1, %v2568_v6 }
 0x1dd   :  { %1578 = vmatmul.msk.f32.gmra.mxu0 %vm518_vm1, %v2568_v6 }
 0x1de   :  { %1608 = vmatmul.msk.f32.gmra.mxu1 %vm518_vm1, %v2568_v6 }
 0x1e0   :  { %1625 = vmatmul.msk.f32.vlgmr.msrb.gmra.mxu3 %vm518_vm1, %v2390_v61  ;;  %1639 = vmatmul.msk.f32.gmra.mxu2 %vm518_vm1, %v2581_v5 }
 0x1e1   :  { %941 = vmatpush.msrb.mxu3 %v484_v11 }
 0x1e3   :  { %942 = vmatpush.msrb.mxu3 %v2253_v43  ;;  %v2633_v43 = vld [vmem:[%s3699_s2 + $0x50] sm:$0xff] }
 0x1e5   :  { %943 = vmatpush.msrb.mxu3 %v470_v24  ;;  %1579 = vmatmul.msk.f32.gmra.mxu0 %vm518_vm1, %v2581_v5 }
 0x1e6   :  { %1609 = vmatmul.msk.f32.gmra.mxu1 %vm518_vm1, %v2581_v5 }
 0x1e7   :  { %944 = vmatpush.msrb.mxu3 %v2260_v53  ;;  %v2646_v53 = vld [vmem:[%s3699_s2 + $0x58] sm:$0xff] }
 0x1e8   :  { %1640 = vmatmul.msk.f32.gmra.mxu2 %vm518_vm1, %v2605_v18  ;;  %1626 = vmatmul.msk.f32.gmra.mxu3 %vm518_vm1, %v2461_v36 }
 0x1e9   :  { %945 = vmatpush.msrb.mxu3 %v2403_v10  ;;  %v2672_v10 = vld [vmem:[%s3699_s2 + $0x68] sm:$0xff] }
 0x1ed   :  { %1580 = vmatmul.msk.f32.gmra.mxu0 %vm518_vm1, %v2605_v18 }
 0x1ee   :  { %1610 = vmatmul.msk.f32.gmra.mxu1 %vm518_vm1, %v2605_v18 }
 0x1f0   :  { %1641 = vmatmul.msk.f32.gmra.mxu2 %vm518_vm1, %v2620_v0  ;;  %1627 = vmatmul.msk.f32.gmra.mxu3 %vm518_vm1, %v2488_v30 }
 0x1f5   :  { %1581 = vmatmul.msk.f32.gmra.mxu0 %vm518_vm1, %v2620_v0 }
 0x1f6   :  { %1611 = vmatmul.msk.f32.gmra.mxu1 %vm518_vm1, %v2620_v0 }
 0x1f8   :  { %1642 = vmatmul.msk.f32.gmra.mxu2 %vm518_vm1, %v2633_v43  ;;  %1628 = vmatmul.msk.f32.gmra.mxu3 %vm518_vm1, %v2509_v31 }
 0x1fd   :  { %1582 = vmatmul.msk.f32.gmra.mxu0 %vm518_vm1, %v2633_v43 }
 0x1fe   :  { %1612 = vmatmul.msk.f32.gmra.mxu1 %vm518_vm1, %v2633_v43 }
 0x200   :  { %1643 = vmatmul.msk.f32.gmra.mxu2 %vm518_vm1, %v2646_v53  ;;  %1629 = vmatmul.msk.f32.gmra.mxu3 %vm518_vm1, %v2527_v17 }
 0x205   :  { %1583 = vmatmul.msk.f32.gmra.mxu0 %vm518_vm1, %v2646_v53 }
 0x206   :  { %1613 = vmatmul.msk.f32.gmra.mxu1 %vm518_vm1, %v2646_v53 }
 0x208   :  { %1644 = vmatmul.msk.f32.gmra.mxu2 %vm518_vm1, %v2659_v54  ;;  %1630 = vmatmul.msk.f32.gmra.mxu3 %vm518_vm1, %v2545_v37 }
 0x20d   :  { %1584 = vmatmul.msk.f32.gmra.mxu0 %vm518_vm1, %v2659_v54 }
 0x20e   :  { %1614 = vmatmul.msk.f32.gmra.mxu1 %vm518_vm1, %v2659_v54 }
 0x210   :  { %1645 = vmatmul.msk.f32.gmra.mxu2 %vm518_vm1, %v2672_v10  ;;  %1631 = vmatmul.msk.f32.gmra.mxu3 %vm518_vm1, %v2563_v12 }
 0x215   :  { %1585 = vmatmul.msk.f32.gmra.mxu0 %vm518_vm1, %v2672_v10 }
 0x216   :  { %1615 = vmatmul.msk.f32.gmra.mxu1 %vm518_vm1, %v2672_v10 }
 0x218   :  { %1646 = vmatmul.msk.f32.gmra.mxu2 %vm518_vm1, %v2685_v22  ;;  %1655 = vmatmul.msk.f32.vlgmr.msra.gmra.mxu3 %vm518_vm1, %v2390_v61  ;;  %v2711_v61 = vld [vmem:[%s3699_s2 + $0x80] sm:$0xff] }
 0x21d   :  { %1586 = vmatmul.msk.f32.gmra.mxu0 %vm518_vm1, %v2685_v22 }
 0x21e   :  { %1616 = vmatmul.msk.f32.gmra.mxu1 %vm518_vm1, %v2685_v22 }
 0x220   :  { %1647 = vmatmul.msk.f32.gmra.mxu2 %vm518_vm1, %v2698_v38  ;;  %1656 = vmatmul.msk.f32.gmra.mxu3 %vm518_vm1, %v2461_v36 }
 0x225   :  { %1587 = vmatmul.msk.f32.gmra.mxu0 %vm518_vm1, %v2698_v38 }
 0x226   :  { %1617 = vmatmul.msk.f32.gmra.mxu1 %vm518_vm1, %v2698_v38 }
 0x228   :  { %1648 = vmatmul.msk.f32.gmra.mxu2 %vm518_vm1, %v2711_v61  ;;  %1657 = vmatmul.msk.f32.gmra.mxu3 %vm518_vm1, %v2488_v30 }
 0x229   :  { %v840_v7 = vpop.f32.mrf.mxu2  ;;  %v695_v1 = vpop.f32.mrf.mxu3 }
 0x22a   :  { %v626_v21 = vpop.f32.mrf.mxu0  ;;  %1360 = vst [vmem:[%s3700_s4 + $0x10] sm:$0xff] %v840_v7 }
 0x22b   :  { %1358 = vst [vmem:[%s3700_s4] sm:$0xff] %v626_v21  ;;  %v733_v28 = vpop.f32.mrf.mxu1 }
 0x22c   :  { %1359 = vst [vmem:[%s3700_s4 + $0x8] sm:$0xff] %v733_v28 }
 0x22d   :  { %1588 = vmatmul.msk.f32.gmra.mxu0 %vm518_vm1, %v2711_v61  ;;  %1519 = vst [vmem:[%s3700_s4 + $0x508] sm:$0xff] %v695_v1 }
 0x22e   :  { %1618 = vmatmul.msk.f32.gmra.mxu1 %vm518_vm1, %v2711_v61 }
 0x230   :  { %1649 = vmatmul.msk.f32.gmra.mxu2 %vm518_vm1, %v2733_v63  ;;  %1658 = vmatmul.msk.f32.gmra.mxu3 %vm518_vm1, %v2509_v31 }
 0x232   :  { %v629_v41 = vpop.f32.mrf.mxu0 }
 0x233   :  { %1365 = vst [vmem:[%s3700_s4 + $0x38] sm:$0xff] %v629_v41  ;;  %v736_v2 = vpop.f32.mrf.mxu1  ;;  %v843_v35 = vpop.f32.mrf.mxu2 }
 0x234   :  { %1366 = vst [vmem:[%s3700_s4 + $0x40] sm:$0xff] %v736_v2  ;;  %v698_v51 = vpop.f32.mrf.mxu3 }
 0x235   :  { %1367 = vst [vmem:[%s3700_s4 + $0x48] sm:$0xff] %v843_v35  ;;  %1589 = vmatmul.msk.f32.gmra.mxu0 %vm518_vm1, %v2733_v63 }
 0x236   :  { %1619 = vmatmul.msk.f32.gmra.mxu1 %vm518_vm1, %v2733_v63  ;;  %1526 = vst [vmem:[%s3700_s4 + $0x540] sm:$0xff] %v698_v51 }
 0x238   :  { %1650 = vmatmul.msk.f32.gmra.mxu2 %vm518_vm1, %v2758_v42  ;;  %1659 = vmatmul.msk.f32.gmra.mxu3 %vm518_vm1, %v2527_v17 }
 0x23a   :  { %v632_v50 = vpop.f32.mrf.mxu0 }
 0x23b   :  { %1372 = vst [vmem:[%s3700_s4 + $0x70] sm:$0xff] %v632_v50  ;;  %v739_v40 = vpop.f32.mrf.mxu1  ;;  %v846_v23 = vpop.f32.mrf.mxu2 }
 0x23c   :  { %1373 = vst [vmem:[%s3700_s4 + $0x78] sm:$0xff] %v739_v40  ;;  %v701_v39 = vpop.f32.mrf.mxu3 }
 0x23d   :  { %1374 = vst [vmem:[%s3700_s4 + $0x80] sm:$0xff] %v846_v23  ;;  %1590 = vmatmul.msk.f32.gmra.mxu0 %vm518_vm1, %v2758_v42 }
 0x23e   :  { %1620 = vmatmul.msk.f32.gmra.mxu1 %vm518_vm1, %v2758_v42  ;;  %1533 = vst [vmem:[%s3700_s4 + $0x578] sm:$0xff] %v701_v39 }
 0x240   :  { %1651 = vmatmul.msk.f32.gmra.mxu2 %vm518_vm1, %v2783_v3  ;;  %1660 = vmatmul.msk.f32.gmra.mxu3 %vm518_vm1, %v2545_v37 }
 0x242   :  { %v635_v48 = vpop.f32.mrf.mxu0 }
 0x243   :  { %1379 = vst [vmem:[%s3700_s4 + $0xa8] sm:$0xff] %v635_v48  ;;  %v742_v55 = vpop.f32.mrf.mxu1  ;;  %v849_v27 = vpop.f32.mrf.mxu2 }
 0x244   :  { %1380 = vst [vmem:[%s3700_s4 + $0xb0] sm:$0xff] %v742_v55  ;;  %v704_v32 = vpop.f32.mrf.mxu3 }
 0x245   :  { %1381 = vst [vmem:[%s3700_s4 + $0xb8] sm:$0xff] %v849_v27  ;;  %1591 = vmatmul.msk.f32.gmra.mxu0 %vm518_vm1, %v2783_v3 }
 0x246   :  { %1621 = vmatmul.msk.f32.gmra.mxu1 %vm518_vm1, %v2783_v3  ;;  %1540 = vst [vmem:[%s3700_s4 + $0x5b0] sm:$0xff] %v704_v32 }
 0x248   :  { %1652 = vmatmul.msk.f32.gmra.mxu2 %vm518_vm1, %v2808_v57  ;;  %1661 = vmatmul.msk.f32.gmra.mxu3 %vm518_vm1, %v2563_v12 }
 0x24a   :  { %v638_v8 = vpop.f32.mrf.mxu0 }
 0x24b   :  { %1386 = vst [vmem:[%s3700_s4 + $0xe0] sm:$0xff] %v638_v8  ;;  %v745_v59 = vpop.f32.mrf.mxu1  ;;  %v852_v49 = vpop.f32.mrf.mxu2 }
 0x24c   :  { %1387 = vst [vmem:[%s3700_s4 + $0xe8] sm:$0xff] %v745_v59  ;;  %v707_v47 = vpop.f32.mrf.mxu3 }
 0x24d   :  { %1388 = vst [vmem:[%s3700_s4 + $0xf0] sm:$0xff] %v852_v49  ;;  %1592 = vmatmul.msk.f32.gmra.mxu0 %vm518_vm1, %v2808_v57 }
 0x24e   :  { %1622 = vmatmul.msk.f32.gmra.mxu1 %vm518_vm1, %v2808_v57  ;;  %1547 = vst [vmem:[%s3700_s4 + $0x5e8] sm:$0xff] %v707_v47 }
 0x250   :  { %1653 = vmatmul.msk.f32.gmra.mxu2 %vm518_vm1, %v2833_v19  ;;  %1662 = vmatmul.msk.f32.vlgmr.msrb.gmra.mxu3 %vm518_vm1, %v2395_v60 }
 0x252   :  { %v641_v9 = vpop.f32.mrf.mxu0 }
 0x253   :  { %1393 = vst [vmem:[%s3700_s4 + $0x118] sm:$0xff] %v641_v9  ;;  %v748_v52 = vpop.f32.mrf.mxu1  ;;  %v855_v62 = vpop.f32.mrf.mxu2 }
 0x254   :  { %1394 = vst [vmem:[%s3700_s4 + $0x120] sm:$0xff] %v748_v52  ;;  %v710_v13 = vpop.f32.mrf.mxu3 }
 0x255   :  { %1395 = vst [vmem:[%s3700_s4 + $0x128] sm:$0xff] %v855_v62  ;;  %1593 = vmatmul.msk.f32.gmra.mxu0 %vm518_vm1, %v2833_v19 }
 0x256   :  { %1623 = vmatmul.msk.f32.gmra.mxu1 %vm518_vm1, %v2833_v19  ;;  %1554 = vst [vmem:[%s3700_s4 + $0x620] sm:$0xff] %v710_v13 }
 0x258   :  { %1654 = vmatmul.msk.f32.gmra.mxu2 %vm518_vm1, %v2858_v46  ;;  %1663 = vmatmul.msk.f32.gmra.mxu3 %vm518_vm1, %v2466_v16 }
 0x25a   :  { %v644_v26 = vpop.f32.mrf.mxu0 }
 0x25b   :  { %1400 = vst [vmem:[%s3700_s4 + $0x150] sm:$0xff] %v644_v26  ;;  %v751_v44 = vpop.f32.mrf.mxu1  ;;  %v858_v45 = vpop.f32.mrf.mxu2 }
 0x25c   :  { %1401 = vst [vmem:[%s3700_s4 + $0x158] sm:$0xff] %v751_v44  ;;  %v713_v20 = vpop.f32.mrf.mxu3 }
 0x25d   :  { %1402 = vst [vmem:[%s3700_s4 + $0x160] sm:$0xff] %v858_v45  ;;  %1594 = vmatmul.msk.f32.gmra.mxu0 %vm518_vm1, %v2858_v46 }
 0x25e   :  { %1624 = vmatmul.msk.f32.gmra.mxu1 %vm518_vm1, %v2858_v46  ;;  %1561 = vst [vmem:[%s3700_s4 + $0x658] sm:$0xff] %v713_v20 }
 0x260   :  { %1752 = vmatmul.msk.f32.vlgmr.msrb.gmra.mxu2 %vm518_vm1, %v2395_v60  ;;  %1664 = vmatmul.msk.f32.gmra.mxu3 %vm518_vm1, %v2493_v33 }
 0x262   :  { %v647_v25 = vpop.f32.mrf.mxu0 }
 0x263   :  { %1407 = vst [vmem:[%s3700_s4 + $0x188] sm:$0xff] %v647_v25  ;;  %v754_v58 = vpop.f32.mrf.mxu1  ;;  %v861_v29 = vpop.f32.mrf.mxu2 }
 0x264   :  { %1408 = vst [vmem:[%s3700_s4 + $0x190] sm:$0xff] %v754_v58  ;;  %v802_v11 = vpop.f32.mrf.mxu3 }
 0x265   :  { %1409 = vst [vmem:[%s3700_s4 + $0x198] sm:$0xff] %v861_v29  ;;  %1692 = vmatmul.msk.f32.vlgmr.msrb.gmra.mxu0 %vm518_vm1, %v2395_v60 }
 0x266   :  { %1722 = vmatmul.msk.f32.vlgmr.msrb.gmra.mxu1 %vm518_vm1, %v2395_v60  ;;  %1520 = vst [vmem:[%s3700_s4 + $0x510] sm:$0xff] %v802_v11 }
 0x268   :  { %1753 = vmatmul.msk.f32.gmra.mxu2 %vm518_vm1, %v2466_v16  ;;  %1665 = vmatmul.msk.f32.gmra.mxu3 %vm518_vm1, %v2514_v34 }
 0x26a   :  { %v650_v15 = vpop.f32.mrf.mxu0 }
 0x26b   :  { %1414 = vst [vmem:[%s3700_s4 + $0x1c0] sm:$0xff] %v650_v15  ;;  %v757_v4 = vpop.f32.mrf.mxu1  ;;  %v864_v24 = vpop.f32.mrf.mxu2 }
 0x26c   :  { %1415 = vst [vmem:[%s3700_s4 + $0x1c8] sm:$0xff] %v757_v4  ;;  %v805_v60 = vpop.f32.mrf.mxu3 }
 0x26d   :  { %1416 = vst [vmem:[%s3700_s4 + $0x1d0] sm:$0xff] %v864_v24  ;;  %1693 = vmatmul.msk.f32.gmra.mxu0 %vm518_vm1, %v2466_v16 }
 0x26e   :  { %1723 = vmatmul.msk.f32.gmra.mxu1 %vm518_vm1, %v2466_v16  ;;  %1527 = vst [vmem:[%s3700_s4 + $0x548] sm:$0xff] %v805_v60 }
 0x270   :  { %1754 = vmatmul.msk.f32.gmra.mxu2 %vm518_vm1, %v2493_v33  ;;  %1666 = vmatmul.msk.f32.gmra.mxu3 %vm518_vm1, %v2532_v14 }
 0x272   :  { %v653_v7 = vpop.f32.mrf.mxu0 }
 0x273   :  { %1421 = vst [vmem:[%s3700_s4 + $0x1f8] sm:$0xff] %v653_v7  ;;  %v760_v21 = vpop.f32.mrf.mxu1  ;;  %v867_v1 = vpop.f32.mrf.mxu2 }
 0x274   :  { %1422 = vst [vmem:[%s3700_s4 + $0x200] sm:$0xff] %v760_v21  ;;  %v808_v16 = vpop.f32.mrf.mxu3 }
 0x275   :  { %1423 = vst [vmem:[%s3700_s4 + $0x208] sm:$0xff] %v867_v1  ;;  %1694 = vmatmul.msk.f32.gmra.mxu0 %vm518_vm1, %v2493_v33 }
 0x276   :  { %1724 = vmatmul.msk.f32.gmra.mxu1 %vm518_vm1, %v2493_v33  ;;  %1534 = vst [vmem:[%s3700_s4 + $0x580] sm:$0xff] %v808_v16 }
 0x278   :  { %1755 = vmatmul.msk.f32.gmra.mxu2 %vm518_vm1, %v2514_v34  ;;  %1667 = vmatmul.msk.f32.gmra.mxu3 %vm518_vm1, %v2550_v56 }
 0x27a   :  { %v656_v28 = vpop.f32.mrf.mxu0 }
 0x27b   :  { %1428 = vst [vmem:[%s3700_s4 + $0x230] sm:$0xff] %v656_v28  ;;  %v763_v41 = vpop.f32.mrf.mxu1  ;;  %v870_v2 = vpop.f32.mrf.mxu2 }
 0x27c   :  { %1429 = vst [vmem:[%s3700_s4 + $0x238] sm:$0xff] %v763_v41  ;;  %v811_v33 = vpop.f32.mrf.mxu3 }
 0x27d   :  { %1430 = vst [vmem:[%s3700_s4 + $0x240] sm:$0xff] %v870_v2  ;;  %1695 = vmatmul.msk.f32.gmra.mxu0 %vm518_vm1, %v2514_v34 }
 0x27e   :  { %1725 = vmatmul.msk.f32.gmra.mxu1 %vm518_vm1, %v2514_v34  ;;  %1541 = vst [vmem:[%s3700_s4 + $0x5b8] sm:$0xff] %v811_v33 }
 0x280   :  { %1756 = vmatmul.msk.f32.gmra.mxu2 %vm518_vm1, %v2532_v14  ;;  %1668 = vmatmul.msk.f32.gmra.mxu3 %vm518_vm1, %v2568_v6 }
 0x282   :  { %v659_v35 = vpop.f32.mrf.mxu0 }
 0x283   :  { %1435 = vst [vmem:[%s3700_s4 + $0x268] sm:$0xff] %v659_v35  ;;  %v766_v51 = vpop.f32.mrf.mxu1  ;;  %v873_v50 = vpop.f32.mrf.mxu2 }
 0x284   :  { %1436 = vst [vmem:[%s3700_s4 + $0x270] sm:$0xff] %v766_v51  ;;  %v814_v34 = vpop.f32.mrf.mxu3 }
 0x285   :  { %1437 = vst [vmem:[%s3700_s4 + $0x278] sm:$0xff] %v873_v50  ;;  %1696 = vmatmul.msk.f32.gmra.mxu0 %vm518_vm1, %v2532_v14 }
 0x286   :  { %1726 = vmatmul.msk.f32.gmra.mxu1 %vm518_vm1, %v2532_v14  ;;  %1548 = vst [vmem:[%s3700_s4 + $0x5f0] sm:$0xff] %v814_v34 }
 0x288   :  { %1757 = vmatmul.msk.f32.gmra.mxu2 %vm518_vm1, %v2550_v56  ;;  %1669 = vmatmul.msk.f32.gmra.mxu3 %vm518_vm1, %v2581_v5 }
 0x28a   :  { %v662_v40 = vpop.f32.mrf.mxu0 }
 0x28b   :  { %1442 = vst [vmem:[%s3700_s4 + $0x2a0] sm:$0xff] %v662_v40  ;;  %v769_v23 = vpop.f32.mrf.mxu1  ;;  %v876_v39 = vpop.f32.mrf.mxu2 }
 0x28c   :  { %1443 = vst [vmem:[%s3700_s4 + $0x2a8] sm:$0xff] %v769_v23  ;;  %v817_v14 = vpop.f32.mrf.mxu3 }
 0x28d   :  { %1444 = vst [vmem:[%s3700_s4 + $0x2b0] sm:$0xff] %v876_v39  ;;  %1697 = vmatmul.msk.f32.gmra.mxu0 %vm518_vm1, %v2550_v56 }
 0x28e   :  { %1727 = vmatmul.msk.f32.gmra.mxu1 %vm518_vm1, %v2550_v56  ;;  %1555 = vst [vmem:[%s3700_s4 + $0x628] sm:$0xff] %v817_v14 }
 0x290   :  { %1758 = vmatmul.msk.f32.gmra.mxu2 %vm518_vm1, %v2568_v6  ;;  %1670 = vmatmul.msk.f32.gmra.mxu3 %vm518_vm1, %v2605_v18 }
 0x292   :  { %v665_v48 = vpop.f32.mrf.mxu0 }
 0x293   :  { %1449 = vst [vmem:[%s3700_s4 + $0x2d8] sm:$0xff] %v665_v48  ;;  %v772_v55 = vpop.f32.mrf.mxu1  ;;  %v879_v27 = vpop.f32.mrf.mxu2 }
 0x294   :  { %1450 = vst [vmem:[%s3700_s4 + $0x2e0] sm:$0xff] %v772_v55  ;;  %v820_v56 = vpop.f32.mrf.mxu3 }
 0x295   :  { %1451 = vst [vmem:[%s3700_s4 + $0x2e8] sm:$0xff] %v879_v27  ;;  %1698 = vmatmul.msk.f32.gmra.mxu0 %vm518_vm1, %v2568_v6 }
 0x296   :  { %1728 = vmatmul.msk.f32.gmra.mxu1 %vm518_vm1, %v2568_v6  ;;  %1562 = vst [vmem:[%s3700_s4 + $0x660] sm:$0xff] %v820_v56 }
 0x298   :  { %1759 = vmatmul.msk.f32.gmra.mxu2 %vm518_vm1, %v2581_v5  ;;  %1671 = vmatmul.msk.f32.gmra.mxu3 %vm518_vm1, %v2620_v0 }
 0x29a   :  { %v668_v32 = vpop.f32.mrf.mxu0 }
 0x29b   :  { %1456 = vst [vmem:[%s3700_s4 + $0x310] sm:$0xff] %v668_v32  ;;  %v775_v8 = vpop.f32.mrf.mxu1  ;;  %v882_v59 = vpop.f32.mrf.mxu2 }
 0x29c   :  { %1457 = vst [vmem:[%s3700_s4 + $0x318] sm:$0xff] %v775_v8  ;;  %v909_v6 = vpop.f32.mrf.mxu3  ;;  %v1818_v8 = vld [vmem:[%s3699_s2 + $0xb8] sm:$0xff] }
 0x29d   :  { %1458 = vst [vmem:[%s3700_s4 + $0x320] sm:$0xff] %v882_v59  ;;  %1699 = vmatmul.msk.f32.gmra.mxu0 %vm518_vm1, %v2581_v5 }
 0x29e   :  { %1729 = vmatmul.msk.f32.gmra.mxu1 %vm518_vm1, %v2581_v5  ;;  %1521 = vst [vmem:[%s3700_s4 + $0x518] sm:$0xff] %v909_v6 }
 0x2a0   :  { %1760 = vmatmul.msk.f32.gmra.mxu2 %vm518_vm1, %v2605_v18  ;;  %1672 = vmatmul.msk.f32.gmra.mxu3 %vm518_vm1, %v2633_v43 }
 0x2a2   :  { %v671_v49 = vpop.f32.mrf.mxu0 }
 0x2a3   :  { %1463 = vst [vmem:[%s3700_s4 + $0x348] sm:$0xff] %v671_v49  ;;  %v778_v47 = vpop.f32.mrf.mxu1  ;;  %v885_v9 = vpop.f32.mrf.mxu2 }
 0x2a4   :  { %1464 = vst [vmem:[%s3700_s4 + $0x350] sm:$0xff] %v778_v47  ;;  %v912_v5 = vpop.f32.mrf.mxu3 }
 0x2a5   :  { %1465 = vst [vmem:[%s3700_s4 + $0x358] sm:$0xff] %v885_v9  ;;  %1700 = vmatmul.msk.f32.gmra.mxu0 %vm518_vm1, %v2605_v18 }
 0x2a6   :  { %1730 = vmatmul.msk.f32.gmra.mxu1 %vm518_vm1, %v2605_v18  ;;  %1528 = vst [vmem:[%s3700_s4 + $0x550] sm:$0xff] %v912_v5 }
 0x2a8   :  { %1761 = vmatmul.msk.f32.gmra.mxu2 %vm518_vm1, %v2620_v0  ;;  %1673 = vmatmul.msk.f32.gmra.mxu3 %vm518_vm1, %v2646_v53 }
 0x2aa   :  { %v674_v52 = vpop.f32.mrf.mxu0 }
 0x2ab   :  { %1470 = vst [vmem:[%s3700_s4 + $0x380] sm:$0xff] %v674_v52  ;;  %v781_v62 = vpop.f32.mrf.mxu1  ;;  %v888_v13 = vpop.f32.mrf.mxu2 }
 0x2ac   :  { %1471 = vst [vmem:[%s3700_s4 + $0x388] sm:$0xff] %v781_v62  ;;  %v915_v18 = vpop.f32.mrf.mxu3 }
 0x2ad   :  { %1472 = vst [vmem:[%s3700_s4 + $0x390] sm:$0xff] %v888_v13  ;;  %1701 = vmatmul.msk.f32.gmra.mxu0 %vm518_vm1, %v2620_v0 }
 0x2ae   :  { %1731 = vmatmul.msk.f32.gmra.mxu1 %vm518_vm1, %v2620_v0  ;;  %1535 = vst [vmem:[%s3700_s4 + $0x588] sm:$0xff] %v915_v18 }
 0x2b0   :  { %1762 = vmatmul.msk.f32.gmra.mxu2 %vm518_vm1, %v2633_v43  ;;  %1674 = vmatmul.msk.f32.gmra.mxu3 %vm518_vm1, %v2659_v54 }
 0x2b2   :  { %v677_v26 = vpop.f32.mrf.mxu0 }
 0x2b3   :  { %1477 = vst [vmem:[%s3700_s4 + $0x3b8] sm:$0xff] %v677_v26  ;;  %v784_v44 = vpop.f32.mrf.mxu1  ;;  %v891_v45 = vpop.f32.mrf.mxu2 }
 0x2b4   :  { %1478 = vst [vmem:[%s3700_s4 + $0x3c0] sm:$0xff] %v784_v44  ;;  %v918_v0 = vpop.f32.mrf.mxu3 }
 0x2b5   :  { %1479 = vst [vmem:[%s3700_s4 + $0x3c8] sm:$0xff] %v891_v45  ;;  %1702 = vmatmul.msk.f32.gmra.mxu0 %vm518_vm1, %v2633_v43 }
 0x2b6   :  { %1732 = vmatmul.msk.f32.gmra.mxu1 %vm518_vm1, %v2633_v43  ;;  %1542 = vst [vmem:[%s3700_s4 + $0x5c0] sm:$0xff] %v918_v0 }
 0x2b8   :  { %1763 = vmatmul.msk.f32.gmra.mxu2 %vm518_vm1, %v2646_v53  ;;  %1675 = vmatmul.msk.f32.gmra.mxu3 %vm518_vm1, %v2672_v10 }
 0x2ba   :  { %v680_v20 = vpop.f32.mrf.mxu0 }
 0x2bb   :  { %1484 = vst [vmem:[%s3700_s4 + $0x3f0] sm:$0xff] %v680_v20  ;;  %v787_v25 = vpop.f32.mrf.mxu1  ;;  %v894_v58 = vpop.f32.mrf.mxu2 }
 0x2bc   :  { %1485 = vst [vmem:[%s3700_s4 + $0x3f8] sm:$0xff] %v787_v25  ;;  %v921_v43 = vpop.f32.mrf.mxu3 }
 0x2bd   :  { %1486 = vst [vmem:[%s3700_s4 + $0x400] sm:$0xff] %v894_v58  ;;  %1703 = vmatmul.msk.f32.gmra.mxu0 %vm518_vm1, %v2646_v53 }
 0x2be   :  { %1733 = vmatmul.msk.f32.gmra.mxu1 %vm518_vm1, %v2646_v53  ;;  %1549 = vst [vmem:[%s3700_s4 + $0x5f8] sm:$0xff] %v921_v43 }
 0x2c0   :  { %1764 = vmatmul.msk.f32.gmra.mxu2 %vm518_vm1, %v2659_v54  ;;  %1676 = vmatmul.msk.f32.gmra.mxu3 %vm518_vm1, %v2685_v22 }
 0x2c2   :  { %v683_v29 = vpop.f32.mrf.mxu0 }
 0x2c3   :  { %1491 = vst [vmem:[%s3700_s4 + $0x428] sm:$0xff] %v683_v29  ;;  %v790_v11 = vpop.f32.mrf.mxu1  ;;  %v897_v15 = vpop.f32.mrf.mxu2 }
 0x2c4   :  { %1492 = vst [vmem:[%s3700_s4 + $0x430] sm:$0xff] %v790_v11  ;;  %v924_v53 = vpop.f32.mrf.mxu3 }
 0x2c5   :  { %1493 = vst [vmem:[%s3700_s4 + $0x438] sm:$0xff] %v897_v15  ;;  %1704 = vmatmul.msk.f32.gmra.mxu0 %vm518_vm1, %v2659_v54 }
 0x2c6   :  { %1734 = vmatmul.msk.f32.gmra.mxu1 %vm518_vm1, %v2659_v54  ;;  %1556 = vst [vmem:[%s3700_s4 + $0x630] sm:$0xff] %v924_v53 }
 0x2c8   :  { %1765 = vmatmul.msk.f32.gmra.mxu2 %vm518_vm1, %v2672_v10  ;;  %1677 = vmatmul.msk.f32.gmra.mxu3 %vm518_vm1, %v2698_v38 }
 0x2ca   :  { %v686_v4 = vpop.f32.mrf.mxu0 }
 0x2cb   :  { %1498 = vst [vmem:[%s3700_s4 + $0x460] sm:$0xff] %v686_v4  ;;  %v793_v24 = vpop.f32.mrf.mxu1  ;;  %v900_v60 = vpop.f32.mrf.mxu2 }
 0x2cc   :  { %1499 = vst [vmem:[%s3700_s4 + $0x468] sm:$0xff] %v793_v24  ;;  %v927_v54 = vpop.f32.mrf.mxu3 }
 0x2cd   :  { %1500 = vst [vmem:[%s3700_s4 + $0x470] sm:$0xff] %v900_v60  ;;  %1705 = vmatmul.msk.f32.gmra.mxu0 %vm518_vm1, %v2672_v10 }
 0x2ce   :  { %1735 = vmatmul.msk.f32.gmra.mxu1 %vm518_vm1, %v2672_v10  ;;  %1563 = vst [vmem:[%s3700_s4 + $0x668] sm:$0xff] %v927_v54 }
 0x2d0   :  { %1766 = vmatmul.msk.f32.gmra.mxu2 %vm518_vm1, %v2685_v22  ;;  %1678 = vmatmul.msk.f32.gmra.mxu3 %vm518_vm1, %v2711_v61 }
 0x2d2   :  { %v689_v7 = vpop.f32.mrf.mxu0 }
 0x2d3   :  { %1505 = vst [vmem:[%s3700_s4 + $0x498] sm:$0xff] %v689_v7  ;;  %v796_v21 = vpop.f32.mrf.mxu1  ;;  %v903_v1 = vpop.f32.mrf.mxu2 }
 0x2d4   :  { %1506 = vst [vmem:[%s3700_s4 + $0x4a0] sm:$0xff] %v796_v21  ;;  %v947_v10 = vpop.f32.mrf.mxu3 }
 0x2d5   :  { %1507 = vst [vmem:[%s3700_s4 + $0x4a8] sm:$0xff] %v903_v1  ;;  %1706 = vmatmul.msk.f32.gmra.mxu0 %vm518_vm1, %v2685_v22 }
 0x2d6   :  { %1736 = vmatmul.msk.f32.gmra.mxu1 %vm518_vm1, %v2685_v22  ;;  %1361 = vst [vmem:[%s3700_s4 + $0x18] sm:$0xff] %v947_v10 }
 0x2d8   :  { %1767 = vmatmul.msk.f32.gmra.mxu2 %vm518_vm1, %v2698_v38  ;;  %1679 = vmatmul.msk.f32.gmra.mxu3 %vm518_vm1, %v2733_v63 }
 0x2da   :  { %v692_v16 = vpop.f32.mrf.mxu0 }
 0x2db   :  { %1512 = vst [vmem:[%s3700_s4 + $0x4d0] sm:$0xff] %v692_v16  ;;  %v799_v28 = vpop.f32.mrf.mxu1  ;;  %v906_v41 = vpop.f32.mrf.mxu2 }
 0x2dc   :  { %1513 = vst [vmem:[%s3700_s4 + $0x4d8] sm:$0xff] %v799_v28  ;;  %v950_v22 = vpop.f32.mrf.mxu3 }
 0x2dd   :  { %1514 = vst [vmem:[%s3700_s4 + $0x4e0] sm:$0xff] %v906_v41  ;;  %1707 = vmatmul.msk.f32.gmra.mxu0 %vm518_vm1, %v2698_v38 }
 0x2de   :  { %1737 = vmatmul.msk.f32.gmra.mxu1 %vm518_vm1, %v2698_v38  ;;  %1368 = vst [vmem:[%s3700_s4 + $0x50] sm:$0xff] %v950_v22 }
 0x2e0   :  { %1768 = vmatmul.msk.f32.gmra.mxu2 %vm518_vm1, %v2711_v61  ;;  %1680 = vmatmul.msk.f32.gmra.mxu3 %vm518_vm1, %v2758_v42 }
 0x2e2   :  { %v1054_v2 = vpop.f32.mrf.mxu0 }
 0x2e3   :  { %1362 = vst [vmem:[%s3700_s4 + $0x20] sm:$0xff] %v1054_v2  ;;  %v1161_v33 = vpop.f32.mrf.mxu1  ;;  %v1268_v35 = vpop.f32.mrf.mxu2 }
 0x2e4   :  { %1363 = vst [vmem:[%s3700_s4 + $0x28] sm:$0xff] %v1161_v33  ;;  %v953_v38 = vpop.f32.mrf.mxu3 }
 0x2e5   :  { %1364 = vst.msk [vmem:[%s3700_s4 + $0x30] sm:$0xff] %vm57_vm0, %v1268_v35  ;;  %1708 = vmatmul.msk.f32.gmra.mxu0 %vm518_vm1, %v2711_v61 }
 0x2e6   :  { %1738 = vmatmul.msk.f32.gmra.mxu1 %vm518_vm1, %v2711_v61  ;;  %1375 = vst [vmem:[%s3700_s4 + $0x88] sm:$0xff] %v953_v38 }
 0x2e8   :  { %1769 = vmatmul.msk.f32.gmra.mxu2 %vm518_vm1, %v2733_v63  ;;  %1681 = vmatmul.msk.f32.gmra.mxu3 %vm518_vm1, %v2783_v3 }
 0x2ea   :  { %v1057_v51 = vpop.f32.mrf.mxu0 }
 0x2eb   :  { %1369 = vst [vmem:[%s3700_s4 + $0x58] sm:$0xff] %v1057_v51  ;;  %v1164_v50 = vpop.f32.mrf.mxu1  ;;  %v1271_v34 = vpop.f32.mrf.mxu2 }
 0x2ec   :  { %1370 = vst [vmem:[%s3700_s4 + $0x60] sm:$0xff] %v1164_v50  ;;  %v956_v61 = vpop.f32.mrf.mxu3 }
 0x2ed   :  { %1371 = vst.msk [vmem:[%s3700_s4 + $0x68] sm:$0xff] %vm57_vm0, %v1271_v34  ;;  %1709 = vmatmul.msk.f32.gmra.mxu0 %vm518_vm1, %v2733_v63 }
 0x2ee   :  { %1739 = vmatmul.msk.f32.gmra.mxu1 %vm518_vm1, %v2733_v63  ;;  %1382 = vst [vmem:[%s3700_s4 + $0xc0] sm:$0xff] %v956_v61 }
 0x2f0   :  { %1770 = vmatmul.msk.f32.gmra.mxu2 %vm518_vm1, %v2758_v42  ;;  %1682 = vmatmul.msk.f32.gmra.mxu3 %vm518_vm1, %v2808_v57 }
 0x2f2   :  { %v1060_v40 = vpop.f32.mrf.mxu0 }
 0x2f3   :  { %1376 = vst [vmem:[%s3700_s4 + $0x90] sm:$0xff] %v1060_v40  ;;  %v1167_v23 = vpop.f32.mrf.mxu1  ;;  %v1274_v39 = vpop.f32.mrf.mxu2 }
 0x2f4   :  { %1377 = vst [vmem:[%s3700_s4 + $0x98] sm:$0xff] %v1167_v23  ;;  %v959_v63 = vpop.f32.mrf.mxu3 }
 0x2f5   :  { %1378 = vst.msk [vmem:[%s3700_s4 + $0xa0] sm:$0xff] %vm57_vm0, %v1274_v39  ;;  %1710 = vmatmul.msk.f32.gmra.mxu0 %vm518_vm1, %v2758_v42 }
 0x2f6   :  { %1740 = vmatmul.msk.f32.gmra.mxu1 %vm518_vm1, %v2758_v42  ;;  %1389 = vst [vmem:[%s3700_s4 + $0xf8] sm:$0xff] %v959_v63 }
 0x2f8   :  { %1771 = vmatmul.msk.f32.gmra.mxu2 %vm518_vm1, %v2783_v3  ;;  %1683 = vmatmul.msk.f32.gmra.mxu3 %vm518_vm1, %v2833_v19 }
 0x2fa   :  { %v1063_v14 = vpop.f32.mrf.mxu0 }
 0x2fb   :  { %1383 = vst [vmem:[%s3700_s4 + $0xc8] sm:$0xff] %v1063_v14  ;;  %v1170_v48 = vpop.f32.mrf.mxu1  ;;  %v1277_v55 = vpop.f32.mrf.mxu2 }
 0x2fc   :  { %1384 = vst [vmem:[%s3700_s4 + $0xd0] sm:$0xff] %v1170_v48  ;;  %v962_v42 = vpop.f32.mrf.mxu3 }
 0x2fd   :  { %1385 = vst.msk [vmem:[%s3700_s4 + $0xd8] sm:$0xff] %vm57_vm0, %v1277_v55  ;;  %1711 = vmatmul.msk.f32.gmra.mxu0 %vm518_vm1, %v2783_v3 }
 0x2fe   :  { %1741 = vmatmul.msk.f32.gmra.mxu1 %vm518_vm1, %v2783_v3  ;;  %1396 = vst [vmem:[%s3700_s4 + $0x130] sm:$0xff] %v962_v42 }
 0x300   :  { %1772 = vmatmul.msk.f32.gmra.mxu2 %vm518_vm1, %v2808_v57  ;;  %1684 = vmatmul.msk.f32.gmra.mxu3 %vm518_vm1, %v2858_v46 }
 0x302   :  { %v1066_v27 = vpop.f32.mrf.mxu0 }
 0x303   :  { %1390 = vst [vmem:[%s3700_s4 + $0x100] sm:$0xff] %v1066_v27  ;;  %v1173_v56 = vpop.f32.mrf.mxu1  ;;  %v1280_v32 = vpop.f32.mrf.mxu2 }
 0x304   :  { %1391 = vst [vmem:[%s3700_s4 + $0x108] sm:$0xff] %v1173_v56  ;;  %v965_v3 = vpop.f32.mrf.mxu3 }
 0x305   :  { %1392 = vst.msk [vmem:[%s3700_s4 + $0x110] sm:$0xff] %vm57_vm0, %v1280_v32  ;;  %1712 = vmatmul.msk.f32.gmra.mxu0 %vm518_vm1, %v2808_v57 }
 0x306   :  { %1742 = vmatmul.msk.f32.gmra.mxu1 %vm518_vm1, %v2808_v57  ;;  %1403 = vst [vmem:[%s3700_s4 + $0x168] sm:$0xff] %v965_v3 }
 0x308   :  { %1773 = vmatmul.msk.f32.gmra.mxu2 %vm518_vm1, %v2833_v19  ;;  %1685 = vmatmul.msk.f32.gmra.mxu3 %vm518_vm1, %v1818_v8 }
 0x30a   :  { %v1069_v59 = vpop.f32.mrf.mxu0 }
 0x30b   :  { %1397 = vst [vmem:[%s3700_s4 + $0x138] sm:$0xff] %v1069_v59  ;;  %v1176_v6 = vpop.f32.mrf.mxu1  ;;  %v1283_v57 = vpop.f32.mrf.mxu2 }
 0x30c   :  { %1398 = vst [vmem:[%s3700_s4 + $0x140] sm:$0xff] %v1176_v6  ;;  %v968_v49 = vpop.f32.mrf.mxu3 }
 0x30d   :  { %1399 = vst.msk [vmem:[%s3700_s4 + $0x148] sm:$0xff] %vm57_vm0, %v1283_v57  ;;  %1713 = vmatmul.msk.f32.gmra.mxu0 %vm518_vm1, %v2833_v19 }
 0x30e   :  { %1743 = vmatmul.msk.f32.gmra.mxu1 %vm518_vm1, %v2833_v19  ;;  %1410 = vst [vmem:[%s3700_s4 + $0x1a0] sm:$0xff] %v968_v49 }
 0x310   :  { %1774 = vmatmul.msk.f32.gmra.mxu2 %vm518_vm1, %v2858_v46  ;;  %1686 = vmatmul.msk.f32.gmra.mxu3 %vm518_vm1, %v2461_v36 }
 0x312   :  { %v1072_v47 = vpop.f32.mrf.mxu0 }
 0x313   :  { %1404 = vst [vmem:[%s3700_s4 + $0x170] sm:$0xff] %v1072_v47  ;;  %v1179_v9 = vpop.f32.mrf.mxu1  ;;  %v1286_v5 = vpop.f32.mrf.mxu2 }
 0x314   :  { %1405 = vst [vmem:[%s3700_s4 + $0x178] sm:$0xff] %v1179_v9  ;;  %v971_v19 = vpop.f32.mrf.mxu3 }
 0x315   :  { %1406 = vst.msk [vmem:[%s3700_s4 + $0x180] sm:$0xff] %vm57_vm0, %v1286_v5  ;;  %1714 = vmatmul.msk.f32.gmra.mxu0 %vm518_vm1, %v2858_v46 }
 0x316   :  { %1744 = vmatmul.msk.f32.gmra.mxu1 %vm518_vm1, %v2858_v46  ;;  %1417 = vst [vmem:[%s3700_s4 + $0x1d8] sm:$0xff] %v971_v19 }
 0x318   :  { %1775 = vmatmul.msk.f32.gmra.mxu2 %vm518_vm1, %v1818_v8  ;;  %1687 = vmatmul.msk.f32.gmra.mxu3 %vm518_vm1, %v2488_v30 }
 0x31a   :  { %v1075_v52 = vpop.f32.mrf.mxu0 }
 0x31b   :  { %1411 = vst [vmem:[%s3700_s4 + $0x1a8] sm:$0xff] %v1075_v52  ;;  %v1182_v62 = vpop.f32.mrf.mxu1  ;;  %v1289_v13 = vpop.f32.mrf.mxu2 }
 0x31c   :  { %1412 = vst [vmem:[%s3700_s4 + $0x1b0] sm:$0xff] %v1182_v62  ;;  %v974_v46 = vpop.f32.mrf.mxu3 }
 0x31d   :  { %1413 = vst.msk [vmem:[%s3700_s4 + $0x1b8] sm:$0xff] %vm57_vm0, %v1289_v13  ;;  %1715 = vmatmul.msk.f32.gmra.mxu0 %vm518_vm1, %v1818_v8 }
 0x31e   :  { %1745 = vmatmul.msk.f32.gmra.mxu1 %vm518_vm1, %v1818_v8  ;;  %1424 = vst [vmem:[%s3700_s4 + $0x210] sm:$0xff] %v974_v46 }
 0x320   :  { %1776 = vmatmul.msk.f32.gmra.mxu2 %vm518_vm1, %v2461_v36  ;;  %1688 = vmatmul.msk.f32.gmra.mxu3 %vm518_vm1, %v2509_v31 }
 0x322   :  { %v1078_v18 = vpop.f32.mrf.mxu0 }
 0x323   :  { %1418 = vst [vmem:[%s3700_s4 + $0x1e0] sm:$0xff] %v1078_v18  ;;  %v1185_v26 = vpop.f32.mrf.mxu1  ;;  %v1292_v44 = vpop.f32.mrf.mxu2 }
 0x324   :  { %1419 = vst [vmem:[%s3700_s4 + $0x1e8] sm:$0xff] %v1185_v26  ;;  %v977_v45 = vpop.f32.mrf.mxu3 }
 0x325   :  { %1420 = vst.msk [vmem:[%s3700_s4 + $0x1f0] sm:$0xff] %vm57_vm0, %v1292_v44  ;;  %1716 = vmatmul.msk.f32.gmra.mxu0 %vm518_vm1, %v2461_v36 }
 0x326   :  { %1746 = vmatmul.msk.f32.gmra.mxu1 %vm518_vm1, %v2461_v36  ;;  %1431 = vst [vmem:[%s3700_s4 + $0x248] sm:$0xff] %v977_v45 }
 0x328   :  { %1777 = vmatmul.msk.f32.gmra.mxu2 %vm518_vm1, %v2488_v30  ;;  %1689 = vmatmul.msk.f32.gmra.mxu3 %vm518_vm1, %v2527_v17 }
 0x32a   :  { %v1081_v0 = vpop.f32.mrf.mxu0 }
 0x32b   :  { %1425 = vst [vmem:[%s3700_s4 + $0x218] sm:$0xff] %v1081_v0  ;;  %v1188_v20 = vpop.f32.mrf.mxu1  ;;  %v1295_v25 = vpop.f32.mrf.mxu2 }
 0x32c   :  { %1426 = vst [vmem:[%s3700_s4 + $0x220] sm:$0xff] %v1188_v20  ;;  %v980_v36 = vpop.f32.mrf.mxu3 }
 0x32d   :  { %1427 = vst.msk [vmem:[%s3700_s4 + $0x228] sm:$0xff] %vm57_vm0, %v1295_v25  ;;  %1717 = vmatmul.msk.f32.gmra.mxu0 %vm518_vm1, %v2488_v30 }
 0x32e   :  { %1747 = vmatmul.msk.f32.gmra.mxu1 %vm518_vm1, %v2488_v30  ;;  %1438 = vst [vmem:[%s3700_s4 + $0x280] sm:$0xff] %v980_v36 }
 0x330   :  { %1778 = vmatmul.msk.f32.gmra.mxu2 %vm518_vm1, %v2509_v31  ;;  %1690 = vmatmul.msk.f32.gmra.mxu3 %vm518_vm1, %v2545_v37 }
 0x332   :  { %v1084_v58 = vpop.f32.mrf.mxu0 }
 0x333   :  { %1432 = vst [vmem:[%s3700_s4 + $0x250] sm:$0xff] %v1084_v58  ;;  %v1191_v43 = vpop.f32.mrf.mxu1  ;;  %v1298_v29 = vpop.f32.mrf.mxu2 }
 0x334   :  { %1433 = vst [vmem:[%s3700_s4 + $0x258] sm:$0xff] %v1191_v43  ;;  %v983_v30 = vpop.f32.mrf.mxu3 }
 0x335   :  { %1434 = vst.msk [vmem:[%s3700_s4 + $0x260] sm:$0xff] %vm57_vm0, %v1298_v29  ;;  %1718 = vmatmul.msk.f32.gmra.mxu0 %vm518_vm1, %v2509_v31 }
 0x336   :  { %1748 = vmatmul.msk.f32.gmra.mxu1 %vm518_vm1, %v2509_v31  ;;  %1445 = vst [vmem:[%s3700_s4 + $0x2b8] sm:$0xff] %v983_v30 }
 0x338   :  { %1779 = vmatmul.msk.f32.gmra.mxu2 %vm518_vm1, %v2527_v17  ;;  %1691 = vmatmul.msk.f32.gmra.mxu3 %vm518_vm1, %v2563_v12 }
 0x33a   :  { %v1087_v11 = vpop.f32.mrf.mxu0 }
 0x33b   :  { %1439 = vst [vmem:[%s3700_s4 + $0x288] sm:$0xff] %v1087_v11  ;;  %v1194_v15 = vpop.f32.mrf.mxu1  ;;  %v1301_v53 = vpop.f32.mrf.mxu2 }
 0x33c   :  { %1440 = vst [vmem:[%s3700_s4 + $0x290] sm:$0xff] %v1194_v15  ;;  %v986_v31 = vpop.f32.mrf.mxu3 }
 0x33d   :  { %1441 = vst.msk [vmem:[%s3700_s4 + $0x298] sm:$0xff] %vm57_vm0, %v1301_v53  ;;  %1719 = vmatmul.msk.f32.gmra.mxu0 %vm518_vm1, %v2527_v17 }
 0x33e   :  { %1749 = vmatmul.msk.f32.gmra.mxu1 %vm518_vm1, %v2527_v17  ;;  %1452 = vst [vmem:[%s3700_s4 + $0x2f0] sm:$0xff] %v986_v31 }
 0x340   :  { %1780 = vmatmul.msk.f32.gmra.mxu2 %vm518_vm1, %v2545_v37 }
 0x342   :  { %v1090_v4 = vpop.f32.mrf.mxu0 }
 0x343   :  { %1446 = vst [vmem:[%s3700_s4 + $0x2c0] sm:$0xff] %v1090_v4  ;;  %v1197_v24 = vpop.f32.mrf.mxu1  ;;  %v1304_v60 = vpop.f32.mrf.mxu2 }
 0x344   :  { %1447 = vst [vmem:[%s3700_s4 + $0x2c8] sm:$0xff] %v1197_v24  ;;  %v989_v54 = vpop.f32.mrf.mxu3 }
 0x345   :  { %1448 = vst.msk [vmem:[%s3700_s4 + $0x2d0] sm:$0xff] %vm57_vm0, %v1304_v60  ;;  %1720 = vmatmul.msk.f32.gmra.mxu0 %vm518_vm1, %v2545_v37 }
 0x346   :  { %1750 = vmatmul.msk.f32.gmra.mxu1 %vm518_vm1, %v2545_v37  ;;  %1459 = vst [vmem:[%s3700_s4 + $0x328] sm:$0xff] %v989_v54 }
 0x348   :  { %1781 = vmatmul.msk.f32.gmra.mxu2 %vm518_vm1, %v2563_v12 }
 0x34a   :  { %v1093_v17 = vpop.f32.mrf.mxu0 }
 0x34b   :  { %1453 = vst [vmem:[%s3700_s4 + $0x2f8] sm:$0xff] %v1093_v17  ;;  %v1200_v7 = vpop.f32.mrf.mxu1  ;;  %v1307_v21 = vpop.f32.mrf.mxu2 }
 0x34c   :  { %1454 = vst [vmem:[%s3700_s4 + $0x300] sm:$0xff] %v1200_v7  ;;  %v992_v1 = vpop.f32.mrf.mxu3 }
 0x34d   :  { %1455 = vst.msk [vmem:[%s3700_s4 + $0x308] sm:$0xff] %vm57_vm0, %v1307_v21  ;;  %1721 = vmatmul.msk.f32.gmra.mxu0 %vm518_vm1, %v2563_v12 }
 0x34e   :  { %1751 = vmatmul.msk.f32.gmra.mxu1 %vm518_vm1, %v2563_v12  ;;  %1466 = vst [vmem:[%s3700_s4 + $0x360] sm:$0xff] %v992_v1 }
 0x352   :  { %v1096_v37 = vpop.f32.mrf.mxu0 }
 0x353   :  { %1460 = vst [vmem:[%s3700_s4 + $0x330] sm:$0xff] %v1096_v37  ;;  %v1203_v10 = vpop.f32.mrf.mxu1  ;;  %v1310_v16 = vpop.f32.mrf.mxu2 }
 0x354   :  { %1461 = vst [vmem:[%s3700_s4 + $0x338] sm:$0xff] %v1203_v10  ;;  %v995_v28 = vpop.f32.mrf.mxu3 }
 0x355   :  { %1462 = vst.msk [vmem:[%s3700_s4 + $0x340] sm:$0xff] %vm57_vm0, %v1310_v16 }
 0x356   :  { %1473 = vst [vmem:[%s3700_s4 + $0x398] sm:$0xff] %v995_v28 }
 0x35a   :  { %v1099_v12 = vpop.f32.mrf.mxu0 }
 0x35b   :  { %1467 = vst [vmem:[%s3700_s4 + $0x368] sm:$0xff] %v1099_v12  ;;  %v1206_v41 = vpop.f32.mrf.mxu1  ;;  %v1313_v22 = vpop.f32.mrf.mxu2 }
 0x35c   :  { %1468 = vst [vmem:[%s3700_s4 + $0x370] sm:$0xff] %v1206_v41  ;;  %v998_v2 = vpop.f32.mrf.mxu3 }
 0x35d   :  { %1469 = vst.msk [vmem:[%s3700_s4 + $0x378] sm:$0xff] %vm57_vm0, %v1313_v22 }
 0x35e   :  { %1480 = vst [vmem:[%s3700_s4 + $0x3d0] sm:$0xff] %v998_v2 }
 0x362   :  { %v1102_v33 = vpop.f32.mrf.mxu0 }
 0x363   :  { %1474 = vst [vmem:[%s3700_s4 + $0x3a0] sm:$0xff] %v1102_v33  ;;  %v1209_v35 = vpop.f32.mrf.mxu1  ;;  %v1316_v38 = vpop.f32.mrf.mxu2 }
 0x364   :  { %1475 = vst [vmem:[%s3700_s4 + $0x3a8] sm:$0xff] %v1209_v35  ;;  %v1001_v51 = vpop.f32.mrf.mxu3 }
 0x365   :  { %1476 = vst.msk [vmem:[%s3700_s4 + $0x3b0] sm:$0xff] %vm57_vm0, %v1316_v38 }
 0x366   :  { %1487 = vst [vmem:[%s3700_s4 + $0x408] sm:$0xff] %v1001_v51 }
 0x36a   :  { %v1105_v50 = vpop.f32.mrf.mxu0 }
 0x36b   :  { %1481 = vst [vmem:[%s3700_s4 + $0x3d8] sm:$0xff] %v1105_v50  ;;  %v1212_v34 = vpop.f32.mrf.mxu1  ;;  %v1319_v61 = vpop.f32.mrf.mxu2 }
 0x36c   :  { %1482 = vst [vmem:[%s3700_s4 + $0x3e0] sm:$0xff] %v1212_v34  ;;  %v1004_v40 = vpop.f32.mrf.mxu3 }
 0x36d   :  { %1483 = vst.msk [vmem:[%s3700_s4 + $0x3e8] sm:$0xff] %vm57_vm0, %v1319_v61 }
 0x36e   :  { %1494 = vst [vmem:[%s3700_s4 + $0x440] sm:$0xff] %v1004_v40 }
 0x372   :  { %v1108_v23 = vpop.f32.mrf.mxu0 }
 0x373   :  { %1488 = vst [vmem:[%s3700_s4 + $0x410] sm:$0xff] %v1108_v23  ;;  %v1215_v39 = vpop.f32.mrf.mxu1  ;;  %v1322_v63 = vpop.f32.mrf.mxu2 }
 0x374   :  { %1489 = vst [vmem:[%s3700_s4 + $0x418] sm:$0xff] %v1215_v39  ;;  %v1007_v14 = vpop.f32.mrf.mxu3 }
 0x375   :  { %1490 = vst.msk [vmem:[%s3700_s4 + $0x420] sm:$0xff] %vm57_vm0, %v1322_v63 }
 0x376   :  { %1501 = vst [vmem:[%s3700_s4 + $0x478] sm:$0xff] %v1007_v14 }
 0x37a   :  { %v1111_v48 = vpop.f32.mrf.mxu0 }
 0x37b   :  { %1495 = vst [vmem:[%s3700_s4 + $0x448] sm:$0xff] %v1111_v48  ;;  %v1218_v55 = vpop.f32.mrf.mxu1  ;;  %v1325_v42 = vpop.f32.mrf.mxu2 }
 0x37c   :  { %1496 = vst [vmem:[%s3700_s4 + $0x450] sm:$0xff] %v1218_v55  ;;  %v1010_v27 = vpop.f32.mrf.mxu3 }
 0x37d   :  { %1497 = vst.msk [vmem:[%s3700_s4 + $0x458] sm:$0xff] %vm57_vm0, %v1325_v42 }
 0x37e   :  { %1508 = vst [vmem:[%s3700_s4 + $0x4b0] sm:$0xff] %v1010_v27 }
 0x382   :  { %v1114_v56 = vpop.f32.mrf.mxu0 }
 0x383   :  { %1502 = vst [vmem:[%s3700_s4 + $0x480] sm:$0xff] %v1114_v56  ;;  %v1221_v32 = vpop.f32.mrf.mxu1  ;;  %v1328_v3 = vpop.f32.mrf.mxu2 }
 0x384   :  { %1503 = vst [vmem:[%s3700_s4 + $0x488] sm:$0xff] %v1221_v32  ;;  %v1013_v8 = vpop.f32.mrf.mxu3 }
 0x385   :  { %1504 = vst.msk [vmem:[%s3700_s4 + $0x490] sm:$0xff] %vm57_vm0, %v1328_v3 }
 0x386   :  { %1515 = vst [vmem:[%s3700_s4 + $0x4e8] sm:$0xff] %v1013_v8 }
 0x38a   :  { %v1117_v59 = vpop.f32.mrf.mxu0 }
 0x38b   :  { %1509 = vst [vmem:[%s3700_s4 + $0x4b8] sm:$0xff] %v1117_v59  ;;  %v1224_v6 = vpop.f32.mrf.mxu1  ;;  %v1331_v57 = vpop.f32.mrf.mxu2 }
 0x38c   :  { %1510 = vst [vmem:[%s3700_s4 + $0x4c0] sm:$0xff] %v1224_v6  ;;  %v1016_v49 = vpop.f32.mrf.mxu3 }
 0x38d   :  { %1511 = vst.msk [vmem:[%s3700_s4 + $0x4c8] sm:$0xff] %vm57_vm0, %v1331_v57 }
 0x38e   :  { %1522 = vst [vmem:[%s3700_s4 + $0x520] sm:$0xff] %v1016_v49 }
 0x392   :  { %v1120_v47 = vpop.f32.mrf.mxu0 }
 0x393   :  { %1516 = vst [vmem:[%s3700_s4 + $0x4f0] sm:$0xff] %v1120_v47  ;;  %v1227_v9 = vpop.f32.mrf.mxu1  ;;  %v1334_v5 = vpop.f32.mrf.mxu2 }
 0x394   :  { %1517 = vst [vmem:[%s3700_s4 + $0x4f8] sm:$0xff] %v1227_v9  ;;  %v1019_v19 = vpop.f32.mrf.mxu3 }
 0x395   :  { %1518 = vst.msk [vmem:[%s3700_s4 + $0x500] sm:$0xff] %vm57_vm0, %v1334_v5 }
 0x396   :  { %1529 = vst [vmem:[%s3700_s4 + $0x558] sm:$0xff] %v1019_v19 }
 0x39a   :  { %v1123_v52 = vpop.f32.mrf.mxu0 }
 0x39b   :  { %1523 = vst [vmem:[%s3700_s4 + $0x528] sm:$0xff] %v1123_v52  ;;  %v1230_v62 = vpop.f32.mrf.mxu1  ;;  %v1337_v13 = vpop.f32.mrf.mxu2 }
 0x39c   :  { %1524 = vst [vmem:[%s3700_s4 + $0x530] sm:$0xff] %v1230_v62  ;;  %v1022_v46 = vpop.f32.mrf.mxu3 }
 0x39d   :  { %1525 = vst.msk [vmem:[%s3700_s4 + $0x538] sm:$0xff] %vm57_vm0, %v1337_v13 }
 0x39e   :  { %1536 = vst [vmem:[%s3700_s4 + $0x590] sm:$0xff] %v1022_v46 }
 0x3a2   :  { %v1126_v18 = vpop.f32.mrf.mxu0 }
 0x3a3   :  { %1530 = vst [vmem:[%s3700_s4 + $0x560] sm:$0xff] %v1126_v18  ;;  %v1233_v26 = vpop.f32.mrf.mxu1  ;;  %v1340_v44 = vpop.f32.mrf.mxu2 }
 0x3a4   :  { %1531 = vst [vmem:[%s3700_s4 + $0x568] sm:$0xff] %v1233_v26  ;;  %v1025_v45 = vpop.f32.mrf.mxu3 }
 0x3a5   :  { %1532 = vst.msk [vmem:[%s3700_s4 + $0x570] sm:$0xff] %vm57_vm0, %v1340_v44 }
 0x3a6   :  { %1543 = vst [vmem:[%s3700_s4 + $0x5c8] sm:$0xff] %v1025_v45 }
 0x3aa   :  { %v1129_v0 = vpop.f32.mrf.mxu0 }
 0x3ab   :  { %1537 = vst [vmem:[%s3700_s4 + $0x598] sm:$0xff] %v1129_v0  ;;  %v1236_v20 = vpop.f32.mrf.mxu1  ;;  %v1343_v25 = vpop.f32.mrf.mxu2 }
 0x3ac   :  { %1538 = vst [vmem:[%s3700_s4 + $0x5a0] sm:$0xff] %v1236_v20  ;;  %v1028_v36 = vpop.f32.mrf.mxu3 }
 0x3ad   :  { %1539 = vst.msk [vmem:[%s3700_s4 + $0x5a8] sm:$0xff] %vm57_vm0, %v1343_v25 }
 0x3ae   :  { %1550 = vst [vmem:[%s3700_s4 + $0x600] sm:$0xff] %v1028_v36 }
 0x3b2   :  { %v1132_v58 = vpop.f32.mrf.mxu0 }
 0x3b3   :  { %1544 = vst [vmem:[%s3700_s4 + $0x5d0] sm:$0xff] %v1132_v58  ;;  %v1239_v43 = vpop.f32.mrf.mxu1  ;;  %v1346_v29 = vpop.f32.mrf.mxu2 }
 0x3b4   :  { %1545 = vst [vmem:[%s3700_s4 + $0x5d8] sm:$0xff] %v1239_v43  ;;  %v1031_v30 = vpop.f32.mrf.mxu3 }
 0x3b5   :  { %1546 = vst.msk [vmem:[%s3700_s4 + $0x5e0] sm:$0xff] %vm57_vm0, %v1346_v29 }
 0x3b6   :  { %1557 = vst [vmem:[%s3700_s4 + $0x638] sm:$0xff] %v1031_v30 }
 0x3ba   :  { %v1135_v11 = vpop.f32.mrf.mxu0 }
 0x3bb   :  { %1551 = vst [vmem:[%s3700_s4 + $0x608] sm:$0xff] %v1135_v11  ;;  %v1242_v15 = vpop.f32.mrf.mxu1  ;;  %v1349_v53 = vpop.f32.mrf.mxu2 }
 0x3bc   :  { %1552 = vst [vmem:[%s3700_s4 + $0x610] sm:$0xff] %v1242_v15  ;;  %v1034_v31 = vpop.f32.mrf.mxu3 }
 0x3bd   :  { %1553 = vst.msk [vmem:[%s3700_s4 + $0x618] sm:$0xff] %vm57_vm0, %v1349_v53 }
 0x3be   :  { %1564 = vst [vmem:[%s3700_s4 + $0x670] sm:$0xff] %v1034_v31 }
 0x3c2   :  { %v1138_v4 = vpop.f32.mrf.mxu0 }
 0x3c3   :  { %1558 = vst [vmem:[%s3700_s4 + $0x640] sm:$0xff] %v1138_v4  ;;  %v1245_v24 = vpop.f32.mrf.mxu1  ;;  %v1352_v60 = vpop.f32.mrf.mxu2 }
 0x3c4   :  { %1559 = vst [vmem:[%s3700_s4 + $0x648] sm:$0xff] %v1245_v24 }
 0x3c5   :  { %1560 = vst.msk [vmem:[%s3700_s4 + $0x650] sm:$0xff] %vm57_vm0, %v1352_v60 }
 0x3ca   :  { %v1141_v54 = vpop.f32.mrf.mxu0 }
 0x3cb   :  { %1565 = vst [vmem:[%s3700_s4 + $0x678] sm:$0xff] %v1141_v54  ;;  %v1248_v17 = vpop.f32.mrf.mxu1  ;;  %v1355_v7 = vpop.f32.mrf.mxu2 }
 0x3cc   :  { %1566 = vst [vmem:[%s3700_s4 + $0x680] sm:$0xff] %v1248_v17 }
 0x3cd   :  { %1567 = vst.msk [vmem:[%s3700_s4 + $0x688] sm:$0xff] %vm57_vm0, %v1355_v7 }

</bundles_post_ra>
